<compile_context>
chip_gen: v6e
topology: v6e:2x2x1
jax: 0.10.0
libtpu: 0.0.40
codegen_flags: <defaults>
</compile_context>

<pallas_src>
import functools

import jax
import jax.numpy as jnp
from jax.experimental import pallas as pl
from jax.experimental.pallas import tpu as pltpu


# ----------------------------------------------------------------------------- fused forward kernel
def _fused_forward_kernel(T, a_ref, x_ref, p_ref, yemb_ref, mask_ref,
                          w_ref, b_ref, o_ref):
    f32 = jnp.float32
    F = x_ref.shape[1]            # node feature dim
    H = b_ref.shape[1]            # hidden channels
    E = yemb_ref.shape[1]         # embedding dim
    TB = yemb_ref.shape[0]        # T * padded GRU batch
    Bp = TB // T                  # padded (sublane-aligned) GRU batch (= 8)
    Bg = p_ref.shape[0]           # number of graphs / sequences
    NC = o_ref.shape[1]           # output classes

    # static row offsets into the packed weight blob (MUST match pack_params order)
    sizes = (F, F, H, H, H, H, E, E, E, H, H, H, H, H, H, H)
    offs, o = [], 0
    for s in sizes:
        offs.append(o)
        o += s
    (o_we1, o_wr1, o_we2, o_wr2, o_we3, o_wr3,
     o_ihr, o_ihz, o_ihn, o_hhr, o_hhz, o_hhn,
     o_l1x, o_l1y, o_l2, o_l3) = offs

    def dot(u, v):
        return jnp.dot(u, v, preferred_element_type=f32)

    # ---------------- graph branch: GraphConv(aggr='mean') x3, mean-pool fused into conv3 --------
    # PyG GraphConv(aggr='mean'):  out = mean_agg(x_j) @ W_rel + b + x @ W_root
    a = a_ref[...]                                            # (N, N) dense mean-agg matrix
    x = x_ref[...]                                            # (N, F)
    h1 = jnp.maximum(dot(dot(a, x), w_ref[o_we1:o_we1 + F, :])
                     + dot(x, w_ref[o_wr1:o_wr1 + F, :])
                     + b_ref[0:1, :], 0.0)
    h2 = jnp.maximum(dot(dot(a, h1), w_ref[o_we2:o_we2 + H, :])
                     + dot(h1, w_ref[o_wr2:o_wr2 + H, :])
                     + b_ref[1:2, :], 0.0)
    # conv3 (no relu) followed by global_mean_pool; rows of P sum to 1 so b3 commutes with P
    g3 = (dot(dot(a, h2), w_ref[o_we3:o_we3 + H, :])
          + dot(h2, w_ref[o_wr3:o_wr3 + H, :]))               # (N, H)
    xg = dot(p_ref[...], g3) + b_ref[2:3, :]                  # (Bg, H)

    # ---------------- GRU branch (torch gate order r, z, n; packed-seq semantics via mask) -------
    yemb = yemb_ref[...]                                      # (T*Bp, E) time-major, batch-padded
    # hoisted per-gate input projections; b_ih (+ r/z halves of b_hh) folded in host-side
    ir_all = dot(yemb, w_ref[o_ihr:o_ihr + E, :]) + b_ref[3:4, :]
    iz_all = dot(yemb, w_ref[o_ihz:o_ihz + E, :]) + b_ref[4:5, :]
    in_all = dot(yemb, w_ref[o_ihn:o_ihn + E, :]) + b_ref[5:6, :]
    # loop-invariant values hoisted out of the unrolled recurrence
    whh_r = w_ref[o_hhr:o_hhr + H, :]
    whh_z = w_ref[o_hhz:o_hhz + H, :]
    whh_n = w_ref[o_hhn:o_hhn + H, :]
    b_hn = jnp.broadcast_to(b_ref[6:7, :], (Bp, H))
    maskf = jnp.broadcast_to(mask_ref[...], (TB, H))          # (T*Bp, H) f32 validity mask

    h = jnp.zeros((Bp, H), dtype=f32)
    for t in range(T):                                        # T static & small -> fully unrolled
        r0 = t * Bp                                           # multiple of 8 -> aligned slices
        hr = dot(h, whh_r)                                    # 3 independent lane-0-aligned
        hz = dot(h, whh_z)                                    #   per-gate matmuls (pipeline on
        hn = dot(h, whh_n)                                    #   the MXU; no lane slicing)
        r = jax.nn.sigmoid(ir_all[r0:r0 + Bp, :] + hr)
        z = jax.nn.sigmoid(iz_all[r0:r0 + Bp, :] + hz)
        n = jnp.tanh(in_all[r0:r0 + Bp, :] + r * (hn + b_hn))
        h_new = n + z * (h - n)
        # packed-sequence semantics: freeze each sequence's hidden state past its length
        h = jnp.where(maskf[r0:r0 + Bp, :] > 0.0, h_new, h)

    # ---------------- concat + MLP head (concat folded into a split first layer) ----------------
    # TODO(synk): F.dropout(p=0.5) implemented as identity (inference-mode semantics).
    hb = h[0:Bg, :]                                           # real (unpadded) sequences
    z1 = jnp.maximum(dot(xg, w_ref[o_l1x:o_l1x + H, :])
                     + dot(hb, w_ref[o_l1y:o_l1y + H, :])
                     + b_ref[7:8, :], 0.0)
    z2 = jnp.maximum(dot(z1, w_ref[o_l2:o_l2 + H, :]) + b_ref[8:9, :], 0.0)
    out = dot(z2, w_ref[o_l3:o_l3 + H, :]) + b_ref[9:10, :]   # classes zero-padded to H lanes
    o_ref[...] = out[:, 0:NC]


# ----------------------------------------------------------------------------- parameter packing
def pack_params(prm, num_classes):
    """Pack all weights into one (R, H) blob and all biases into one (10, H) blob.
    Row order MUST match the offset table in _fused_forward_kernel."""
    f32 = jnp.float32
    H = prm["w_hh"].shape[0]
    wih, whh, bih, bhh = prm["w_ih"], prm["w_hh"], prm["b_ih"], prm["b_hh"]
    wih_r, wih_z, wih_n = wih[:, :H], wih[:, H:2 * H], wih[:, 2 * H:]
    whh_r, whh_z, whh_n = whh[:, :H], whh[:, H:2 * H], whh[:, 2 * H:]
    bih_r, bih_z, bih_n = bih[:, :H], bih[:, H:2 * H], bih[:, 2 * H:]
    bhh_r, bhh_z, bhh_n = bhh[:, :H], bhh[:, H:2 * H], bhh[:, 2 * H:]
    w_lin_pad = jnp.zeros((H, H), f32).at[:, :num_classes].set(prm["w_lin"])
    b_lin_pad = jnp.zeros((1, H), f32).at[:, :num_classes].set(prm["b_lin"])
    w_lin1 = prm["w_lin1"]
    W = jnp.concatenate([
        prm["w_rel1"], prm["w_root1"],          # conv1: [aggr ; root]
        prm["w_rel2"], prm["w_root2"],          # conv2
        prm["w_rel3"], prm["w_root3"],          # conv3
        wih_r, wih_z, wih_n,                    # GRU input projections (per gate)
        whh_r, whh_z, whh_n,                    # GRU hidden projections (per gate)
        w_lin1[:H], w_lin1[H:],                 # lin1 split into x- / y- halves
        prm["w_lin2"], w_lin_pad,               # lin2, lin (padded to H cols)
    ], axis=0).astype(f32)                      # (2F + 7H + 3E + ... , H) = (416, H)
    B = jnp.concatenate([
        prm["b1"], prm["b2"], prm["b3"],
        bih_r + bhh_r, bih_z + bhh_z, bih_n, bhh_n,
        prm["b_lin1"], prm["b_lin2"], b_lin_pad,
    ], axis=0).astype(f32)                      # (10, H)
    return W, B


# ----------------------------------------------------------------------------- wrapper (one dispatch)
def model_forward(w_blob, b_blob, A, X, P, y_emb_flat, mask_flat, *, T, num_classes):
    Bg = P.shape[0]
    kernel = functools.partial(_fused_forward_kernel, T)
    ms = getattr(pltpu, "MemorySpace", None) or getattr(pltpu, "TPUMemorySpace")
    vmem = pl.BlockSpec(memory_space=ms.VMEM)   # whole-array blocks pinned in VMEM
    return pl.pallas_call(
        kernel,
        out_shape=jax.ShapeDtypeStruct((Bg, num_classes), jnp.float32),
        in_specs=[vmem] * 7,
        out_specs=vmem,
    )(A, X, P, y_emb_flat, mask_flat, w_blob, b_blob)


if __name__ == "__main__":
    f32 = jnp.float32
    key = jax.random.PRNGKey(0)
    ks = jax.random.split(key, 16)

    # hyperparameters implied by the module
    IN_CH, HID, N_CLASSES = 8, 32, 4            # num_node_features, hiddenchannels, num_classes
    VOCAB, EMB = 20, 16                         # vocab_size, embeddingdim
    N_NODES, N_GRAPHS = 16, 2
    LENGTHS = [6, 4]
    T = max(LENGTHS)
    B_PAD = 8                                   # sublane-aligned GRU batch

    # ---------------- graph inputs ----------------
    X = jax.random.normal(ks[0], (N_NODES, IN_CH), dtype=f32)
    batch = jnp.array([0] * 8 + [1] * 8, dtype=jnp.int32)

    # deterministic edge_index: bidirectional ring per graph + one chord (source, target)
    src, dst = [], []
    for g in range(N_GRAPHS):
        base = g * 8
        for i in range(8):
            src += [base + i, base + (i + 1) % 8]
            dst += [base + (i + 1) % 8, base + i]
        src += [base, base + 3]
        dst += [base + 3, base]
    src = jnp.array(src, dtype=jnp.int32)
    dst = jnp.array(dst, dtype=jnp.int32)

    # dense mean-aggregation matrix: A[i, j] = 1/in_deg(i) if edge j -> i
    A = jnp.zeros((N_NODES, N_NODES), dtype=f32).at[dst, src].add(1.0)
    deg = A.sum(axis=1, keepdims=True)
    A = jnp.where(deg > 0, A / jnp.maximum(deg, 1.0), 0.0)

    # global_mean_pool matrix
    P = jnp.zeros((N_GRAPHS, N_NODES), dtype=f32).at[batch, jnp.arange(N_NODES)].set(1.0)
    P = P / P.sum(axis=1, keepdims=True)

    # ---------------- parameters (deterministic) ----------------
    def lin_w(k, fi, fo):
        return (jax.random.normal(k, (fi, fo), dtype=f32) / jnp.sqrt(fi)).astype(f32)

    params = {
        # GraphConv: lin_rel (with bias) + lin_root (no bias)
        "w_root1": lin_w(ks[1], IN_CH, HID), "w_rel1": lin_w(ks[2], IN_CH, HID),
        "b1": jnp.zeros((1, HID), f32),
        "w_root2": lin_w(ks[3], HID, HID), "w_rel2": lin_w(ks[4], HID, HID),
        "b2": jnp.full((1, HID), 0.01, f32),
        "w_root3": lin_w(ks[5], HID, HID), "w_rel3": lin_w(ks[6], HID, HID),
        "b3": jnp.full((1, HID), -0.01, f32),
        # GRU (gate order r, z, n), stored concatenated along the output dim
        "w_ih": (jax.random.normal(ks[8], (EMB, 3 * HID), dtype=f32) / jnp.sqrt(EMB)).astype(f32),
        "w_hh": (jax.random.normal(ks[9], (HID, 3 * HID), dtype=f32) / jnp.sqrt(HID)).astype(f32),
        "b_ih": (jax.random.normal(ks[10], (1, 3 * HID), dtype=f32) * 0.01).astype(f32),
        "b_hh": (jax.random.normal(ks[11], (1, 3 * HID), dtype=f32) * 0.01).astype(f32),
        # MLP head
        "w_lin1": lin_w(ks[12], 2 * HID, HID), "b_lin1": jnp.zeros((1, HID), f32),
        "w_lin2": lin_w(ks[13], HID, HID), "b_lin2": jnp.zeros((1, HID), f32),
        "w_lin": lin_w(ks[14], HID, N_CLASSES), "b_lin": jnp.zeros((1, N_CLASSES), f32),
    }

    # pack ~24 tiny parameter arrays into 2 lane-dense blobs ONCE at init time
    W_blob, b_blob = pack_params(params, N_CLASSES)

    # Embedding table (padding_idx=0 -> zero row)
    emb_table = jax.random.normal(ks[7], (VOCAB, EMB), dtype=f32) * 0.1
    emb_table = emb_table.at[0].set(0.0)

    # ---------------- sequence inputs (data[1]['seq']) ----------------
    tok = jax.random.randint(ks[15], (N_GRAPHS, T), 1, VOCAB)
    tlens = jnp.array(LENGTHS, dtype=jnp.int32)
    valid = jnp.arange(T)[None, :] < tlens[:, None]                 # (B, T)
    seq = jnp.where(valid, tok, 0).astype(jnp.int32)                # pad with padding_idx=0

    y_emb = emb_table[seq]                                          # (B, T, E) gather (glue)
    # time-major and batch-padded to 8 rows so every per-step slice is sublane-aligned
    y_emb_tm = jnp.zeros((T, B_PAD, EMB), f32).at[:, :N_GRAPHS, :].set(
        jnp.transpose(y_emb, (1, 0, 2)))
    mask_tm = jnp.zeros((T, B_PAD, 1), f32).at[:, :N_GRAPHS, 0].set(
        jnp.transpose(valid, (1, 0)).astype(f32))
    y_emb_flat = y_emb_tm.reshape(T * B_PAD, EMB)
    mask_flat = mask_tm.reshape(T * B_PAD, 1)

    # ---------------- run ----------------
    out = model_forward(W_blob, b_blob, A, X, P, y_emb_flat, mask_flat,
                        T=T, num_classes=N_CLASSES)
    out = jax.block_until_ready(out)
    assert out.shape == (N_GRAPHS, N_CLASSES)
    assert bool(jnp.all(jnp.isfinite(out)))
    print("KERNEL_OK")
</pallas_src>

<mosaic_0001>
module attributes {stable_mosaic.version = 11 : i64} {
  func.func @_fused_forward_kernel(%arg0: memref<16x16xf32, #tpu.memory_space<vmem>>, %arg1: memref<16x8xf32, #tpu.memory_space<vmem>>, %arg2: memref<2x16xf32, #tpu.memory_space<vmem>>, %arg3: memref<48x16xf32, #tpu.memory_space<vmem>>, %arg4: memref<48x1xf32, #tpu.memory_space<vmem>>, %arg5: memref<416x32xf32, #tpu.memory_space<vmem>>, %arg6: memref<10x32xf32, #tpu.memory_space<vmem>>, %arg7: memref<2x4xf32, #tpu.memory_space<vmem>>) attributes {dimension_semantics = [], scalar_prefetch = 0 : i64, scratch_operands = 0 : i64, tpu.core_type = #tpu.core_type<tc>} {
    %c0 = arith.constant 0 : index
    %c0_0 = arith.constant 0 : index
    %0 = vector.load %arg0[%c0, %c0_0] : memref<16x16xf32, #tpu.memory_space<vmem>>, vector<16x16xf32>
    %c0_1 = arith.constant 0 : index
    %c0_2 = arith.constant 0 : index
    %1 = vector.load %arg1[%c0_1, %c0_2] : memref<16x8xf32, #tpu.memory_space<vmem>>, vector<16x8xf32>
    %cst = arith.constant dense<0.000000e+00> : vector<16x8xf32>
    %2 = tpu.matmul %0, %1, %cst {dimension_numbers = #tpu.dot_dimension_numbers<[1], [0], [0], [1], [0, 0, 1, 1], [], []>} : vector<16x16xf32>, vector<16x8xf32>, vector<16x8xf32> -> vector<16x8xf32>
    %c0_3 = arith.constant 0 : index
    %c0_4 = arith.constant 0 : index
    %3 = vector.load %arg5[%c0_3, %c0_4] : memref<416x32xf32, #tpu.memory_space<vmem>>, vector<8x32xf32>
    %cst_5 = arith.constant dense<0.000000e+00> : vector<16x32xf32>
    %4 = tpu.matmul %2, %3, %cst_5 {dimension_numbers = #tpu.dot_dimension_numbers<[1], [0], [0], [1], [0, 0, 1, 1], [], []>} : vector<16x8xf32>, vector<8x32xf32>, vector<16x32xf32> -> vector<16x32xf32>
    %c8 = arith.constant 8 : index
    %c0_6 = arith.constant 0 : index
    %5 = vector.load %arg5[%c8, %c0_6] : memref<416x32xf32, #tpu.memory_space<vmem>>, vector<8x32xf32>
    %cst_7 = arith.constant dense<0.000000e+00> : vector<16x32xf32>
    %6 = tpu.matmul %1, %5, %cst_7 {dimension_numbers = #tpu.dot_dimension_numbers<[1], [0], [0], [1], [0, 0, 1, 1], [], []>} : vector<16x8xf32>, vector<8x32xf32>, vector<16x32xf32> -> vector<16x32xf32>
    %7 = arith.addf %4, %6 : vector<16x32xf32>
    %c0_8 = arith.constant 0 : index
    %c0_9 = arith.constant 0 : index
    %8 = vector.load %arg6[%c0_8, %c0_9] : memref<10x32xf32, #tpu.memory_space<vmem>>, vector<1x32xf32>
    %9 = vector.broadcast %8 : vector<1x32xf32> to vector<16x32xf32>
    %10 = arith.addf %7, %9 : vector<16x32xf32>
    %cst_10 = arith.constant 0.000000e+00 : f32
    %11 = vector.broadcast %cst_10 : f32 to vector<16x32xf32>
    %12 = arith.maximumf %10, %11 : vector<16x32xf32>
    %cst_11 = arith.constant dense<0.000000e+00> : vector<16x32xf32>
    %13 = tpu.matmul %0, %12, %cst_11 {dimension_numbers = #tpu.dot_dimension_numbers<[1], [0], [0], [1], [0, 0, 1, 1], [], []>} : vector<16x16xf32>, vector<16x32xf32>, vector<16x32xf32> -> vector<16x32xf32>
    %c16 = arith.constant 16 : index
    %c0_12 = arith.constant 0 : index
    %14 = vector.load %arg5[%c16, %c0_12] : memref<416x32xf32, #tpu.memory_space<vmem>>, vector<32x32xf32>
    %cst_13 = arith.constant dense<0.000000e+00> : vector<16x32xf32>
    %15 = tpu.matmul %13, %14, %cst_13 {dimension_numbers = #tpu.dot_dimension_numbers<[1], [0], [0], [1], [0, 0, 1, 1], [], []>} : vector<16x32xf32>, vector<32x32xf32>, vector<16x32xf32> -> vector<16x32xf32>
    %c48 = arith.constant 48 : index
    %c0_14 = arith.constant 0 : index
    %16 = vector.load %arg5[%c48, %c0_14] : memref<416x32xf32, #tpu.memory_space<vmem>>, vector<32x32xf32>
    %cst_15 = arith.constant dense<0.000000e+00> : vector<16x32xf32>
    %17 = tpu.matmul %12, %16, %cst_15 {dimension_numbers = #tpu.dot_dimension_numbers<[1], [0], [0], [1], [0, 0, 1, 1], [], []>} : vector<16x32xf32>, vector<32x32xf32>, vector<16x32xf32> -> vector<16x32xf32>
    %18 = arith.addf %15, %17 : vector<16x32xf32>
    %c1 = arith.constant 1 : index
    %c0_16 = arith.constant 0 : index
    %19 = vector.load %arg6[%c1, %c0_16] : memref<10x32xf32, #tpu.memory_space<vmem>>, vector<1x32xf32>
    %20 = vector.broadcast %19 : vector<1x32xf32> to vector<16x32xf32>
    %21 = arith.addf %18, %20 : vector<16x32xf32>
    %cst_17 = arith.constant 0.000000e+00 : f32
    %22 = vector.broadcast %cst_17 : f32 to vector<16x32xf32>
    %23 = arith.maximumf %21, %22 : vector<16x32xf32>
    %cst_18 = arith.constant dense<0.000000e+00> : vector<16x32xf32>
    %24 = tpu.matmul %0, %23, %cst_18 {dimension_numbers = #tpu.dot_dimension_numbers<[1], [0], [0], [1], [0, 0, 1, 1], [], []>} : vector<16x16xf32>, vector<16x32xf32>, vector<16x32xf32> -> vector<16x32xf32>
    %c80 = arith.constant 80 : index
    %c0_19 = arith.constant 0 : index
    %25 = vector.load %arg5[%c80, %c0_19] : memref<416x32xf32, #tpu.memory_space<vmem>>, vector<32x32xf32>
    %cst_20 = arith.constant dense<0.000000e+00> : vector<16x32xf32>
    %26 = tpu.matmul %24, %25, %cst_20 {dimension_numbers = #tpu.dot_dimension_numbers<[1], [0], [0], [1], [0, 0, 1, 1], [], []>} : vector<16x32xf32>, vector<32x32xf32>, vector<16x32xf32> -> vector<16x32xf32>
    %c112 = arith.constant 112 : index
    %c0_21 = arith.constant 0 : index
    %27 = vector.load %arg5[%c112, %c0_21] : memref<416x32xf32, #tpu.memory_space<vmem>>, vector<32x32xf32>
    %cst_22 = arith.constant dense<0.000000e+00> : vector<16x32xf32>
    %28 = tpu.matmul %23, %27, %cst_22 {dimension_numbers = #tpu.dot_dimension_numbers<[1], [0], [0], [1], [0, 0, 1, 1], [], []>} : vector<16x32xf32>, vector<32x32xf32>, vector<16x32xf32> -> vector<16x32xf32>
    %29 = arith.addf %26, %28 : vector<16x32xf32>
    %c0_23 = arith.constant 0 : index
    %c0_24 = arith.constant 0 : index
    %30 = vector.load %arg2[%c0_23, %c0_24] : memref<2x16xf32, #tpu.memory_space<vmem>>, vector<2x16xf32>
    %cst_25 = arith.constant dense<0.000000e+00> : vector<2x32xf32>
    %31 = tpu.matmul %30, %29, %cst_25 {dimension_numbers = #tpu.dot_dimension_numbers<[1], [0], [0], [1], [0, 0, 1, 1], [], []>} : vector<2x16xf32>, vector<16x32xf32>, vector<2x32xf32> -> vector<2x32xf32>
    %c2 = arith.constant 2 : index
    %c0_26 = arith.constant 0 : index
    %32 = vector.load %arg6[%c2, %c0_26] : memref<10x32xf32, #tpu.memory_space<vmem>>, vector<1x32xf32>
    %33 = vector.broadcast %32 : vector<1x32xf32> to vector<2x32xf32>
    %34 = arith.addf %31, %33 : vector<2x32xf32>
    %c0_27 = arith.constant 0 : index
    %c0_28 = arith.constant 0 : index
    %35 = vector.load %arg3[%c0_27, %c0_28] : memref<48x16xf32, #tpu.memory_space<vmem>>, vector<48x16xf32>
    %c144 = arith.constant 144 : index
    %c0_29 = arith.constant 0 : index
    %36 = vector.load %arg5[%c144, %c0_29] : memref<416x32xf32, #tpu.memory_space<vmem>>, vector<16x32xf32>
    %cst_30 = arith.constant dense<0.000000e+00> : vector<48x32xf32>
    %37 = tpu.matmul %35, %36, %cst_30 {dimension_numbers = #tpu.dot_dimension_numbers<[1], [0], [0], [1], [0, 0, 1, 1], [], []>} : vector<48x16xf32>, vector<16x32xf32>, vector<48x32xf32> -> vector<48x32xf32>
    %c3 = arith.constant 3 : index
    %c0_31 = arith.constant 0 : index
    %38 = vector.load %arg6[%c3, %c0_31] : memref<10x32xf32, #tpu.memory_space<vmem>>, vector<1x32xf32>
    %39 = vector.broadcast %38 : vector<1x32xf32> to vector<48x32xf32>
    %40 = arith.addf %37, %39 : vector<48x32xf32>
    %c160 = arith.constant 160 : index
    %c0_32 = arith.constant 0 : index
    %41 = vector.load %arg5[%c160, %c0_32] : memref<416x32xf32, #tpu.memory_space<vmem>>, vector<16x32xf32>
    %cst_33 = arith.constant dense<0.000000e+00> : vector<48x32xf32>
    %42 = tpu.matmul %35, %41, %cst_33 {dimension_numbers = #tpu.dot_dimension_numbers<[1], [0], [0], [1], [0, 0, 1, 1], [], []>} : vector<48x16xf32>, vector<16x32xf32>, vector<48x32xf32> -> vector<48x32xf32>
    %c4 = arith.constant 4 : index
    %c0_34 = arith.constant 0 : index
    %43 = vector.load %arg6[%c4, %c0_34] : memref<10x32xf32, #tpu.memory_space<vmem>>, vector<1x32xf32>
    %44 = vector.broadcast %43 : vector<1x32xf32> to vector<48x32xf32>
    %45 = arith.addf %42, %44 : vector<48x32xf32>
    %c176 = arith.constant 176 : index
    %c0_35 = arith.constant 0 : index
    %46 = vector.load %arg5[%c176, %c0_35] : memref<416x32xf32, #tpu.memory_space<vmem>>, vector<16x32xf32>
    %cst_36 = arith.constant dense<0.000000e+00> : vector<48x32xf32>
    %47 = tpu.matmul %35, %46, %cst_36 {dimension_numbers = #tpu.dot_dimension_numbers<[1], [0], [0], [1], [0, 0, 1, 1], [], []>} : vector<48x16xf32>, vector<16x32xf32>, vector<48x32xf32> -> vector<48x32xf32>
    %c5 = arith.constant 5 : index
    %c0_37 = arith.constant 0 : index
    %48 = vector.load %arg6[%c5, %c0_37] : memref<10x32xf32, #tpu.memory_space<vmem>>, vector<1x32xf32>
    %49 = vector.broadcast %48 : vector<1x32xf32> to vector<48x32xf32>
    %50 = arith.addf %47, %49 : vector<48x32xf32>
    %c192 = arith.constant 192 : index
    %c0_38 = arith.constant 0 : index
    %51 = vector.load %arg5[%c192, %c0_38] : memref<416x32xf32, #tpu.memory_space<vmem>>, vector<32x32xf32>
    %c224 = arith.constant 224 : index
    %c0_39 = arith.constant 0 : index
    %52 = vector.load %arg5[%c224, %c0_39] : memref<416x32xf32, #tpu.memory_space<vmem>>, vector<32x32xf32>
    %c256 = arith.constant 256 : index
    %c0_40 = arith.constant 0 : index
    %53 = vector.load %arg5[%c256, %c0_40] : memref<416x32xf32, #tpu.memory_space<vmem>>, vector<32x32xf32>
    %c6 = arith.constant 6 : index
    %c0_41 = arith.constant 0 : index
    %54 = vector.load %arg6[%c6, %c0_41] : memref<10x32xf32, #tpu.memory_space<vmem>>, vector<1x32xf32>
    %55 = vector.shape_cast %54 : vector<1x32xf32> to vector<1x32xf32>
    %56 = vector.broadcast %55 : vector<1x32xf32> to vector<8x32xf32>
    %c0_42 = arith.constant 0 : index
    %c0_43 = arith.constant 0 : index
    %57 = vector.load %arg4[%c0_42, %c0_43] : memref<48x1xf32, #tpu.memory_space<vmem>>, vector<48x1xf32>
    %58 = vector.shape_cast %57 : vector<48x1xf32> to vector<48x1xf32>
    %59 = vector.broadcast %58 : vector<48x1xf32> to vector<48x32xf32>
    %cst_44 = arith.constant 0.000000e+00 : f32
    %60 = vector.broadcast %cst_44 : f32 to vector<8x32xf32>
    %cst_45 = arith.constant dense<0.000000e+00> : vector<8x32xf32>
    %61 = tpu.matmul %60, %51, %cst_45 {dimension_numbers = #tpu.dot_dimension_numbers<[1], [0], [0], [1], [0, 0, 1, 1], [], []>} : vector<8x32xf32>, vector<32x32xf32>, vector<8x32xf32> -> vector<8x32xf32>
    %cst_46 = arith.constant dense<0.000000e+00> : vector<8x32xf32>
    %62 = tpu.matmul %60, %52, %cst_46 {dimension_numbers = #tpu.dot_dimension_numbers<[1], [0], [0], [1], [0, 0, 1, 1], [], []>} : vector<8x32xf32>, vector<32x32xf32>, vector<8x32xf32> -> vector<8x32xf32>
    %cst_47 = arith.constant dense<0.000000e+00> : vector<8x32xf32>
    %63 = tpu.matmul %60, %53, %cst_47 {dimension_numbers = #tpu.dot_dimension_numbers<[1], [0], [0], [1], [0, 0, 1, 1], [], []>} : vector<8x32xf32>, vector<32x32xf32>, vector<8x32xf32> -> vector<8x32xf32>
    %64 = vector.extract_strided_slice %40 {offsets = [0, 0], sizes = [8, 32], strides = [1, 1]} : vector<48x32xf32> to vector<8x32xf32>
    %65 = arith.addf %64, %61 : vector<8x32xf32>
    %66 = arith.negf %65 : vector<8x32xf32>
    %67 = math.exp %66 : vector<8x32xf32>
    %cst_48 = arith.constant 1.000000e+00 : f32
    %68 = vector.broadcast %cst_48 : f32 to vector<8x32xf32>
    %69 = arith.addf %68, %67 : vector<8x32xf32>
    %70 = arith.divf %68, %69 : vector<8x32xf32>
    %71 = vector.extract_strided_slice %45 {offsets = [0, 0], sizes = [8, 32], strides = [1, 1]} : vector<48x32xf32> to vector<8x32xf32>
    %72 = arith.addf %71, %62 : vector<8x32xf32>
    %73 = arith.negf %72 : vector<8x32xf32>
    %74 = math.exp %73 : vector<8x32xf32>
    %cst_49 = arith.constant 1.000000e+00 : f32
    %75 = vector.broadcast %cst_49 : f32 to vector<8x32xf32>
    %76 = arith.addf %75, %74 : vector<8x32xf32>
    %77 = arith.divf %75, %76 : vector<8x32xf32>
    %78 = vector.extract_strided_slice %50 {offsets = [0, 0], sizes = [8, 32], strides = [1, 1]} : vector<48x32xf32> to vector<8x32xf32>
    %79 = arith.addf %63, %56 : vector<8x32xf32>
    %80 = arith.mulf %70, %79 : vector<8x32xf32>
    %81 = arith.addf %78, %80 : vector<8x32xf32>
    %82 = math.tanh %81 : vector<8x32xf32>
    %83 = arith.subf %60, %82 : vector<8x32xf32>
    %84 = arith.mulf %77, %83 : vector<8x32xf32>
    %85 = arith.addf %82, %84 : vector<8x32xf32>
    %86 = vector.extract_strided_slice %59 {offsets = [0, 0], sizes = [8, 32], strides = [1, 1]} : vector<48x32xf32> to vector<8x32xf32>
    %cst_50 = arith.constant 0.000000e+00 : f32
    %87 = vector.broadcast %cst_50 : f32 to vector<8x32xf32>
    %88 = arith.cmpf ogt, %86, %87 : vector<8x32xf32>
    %89 = arith.select %88, %85, %60 : vector<8x32xi1>, vector<8x32xf32>
    %cst_51 = arith.constant dense<0.000000e+00> : vector<8x32xf32>
    %90 = tpu.matmul %89, %51, %cst_51 {dimension_numbers = #tpu.dot_dimension_numbers<[1], [0], [0], [1], [0, 0, 1, 1], [], []>} : vector<8x32xf32>, vector<32x32xf32>, vector<8x32xf32> -> vector<8x32xf32>
    %cst_52 = arith.constant dense<0.000000e+00> : vector<8x32xf32>
    %91 = tpu.matmul %89, %52, %cst_52 {dimension_numbers = #tpu.dot_dimension_numbers<[1], [0], [0], [1], [0, 0, 1, 1], [], []>} : vector<8x32xf32>, vector<32x32xf32>, vector<8x32xf32> -> vector<8x32xf32>
    %cst_53 = arith.constant dense<0.000000e+00> : vector<8x32xf32>
    %92 = tpu.matmul %89, %53, %cst_53 {dimension_numbers = #tpu.dot_dimension_numbers<[1], [0], [0], [1], [0, 0, 1, 1], [], []>} : vector<8x32xf32>, vector<32x32xf32>, vector<8x32xf32> -> vector<8x32xf32>
    %93 = vector.extract_strided_slice %40 {offsets = [8, 0], sizes = [8, 32], strides = [1, 1]} : vector<48x32xf32> to vector<8x32xf32>
    %94 = arith.addf %93, %90 : vector<8x32xf32>
    %95 = arith.negf %94 : vector<8x32xf32>
    %96 = math.exp %95 : vector<8x32xf32>
    %cst_54 = arith.constant 1.000000e+00 : f32
    %97 = vector.broadcast %cst_54 : f32 to vector<8x32xf32>
    %98 = arith.addf %97, %96 : vector<8x32xf32>
    %99 = arith.divf %97, %98 : vector<8x32xf32>
    %100 = vector.extract_strided_slice %45 {offsets = [8, 0], sizes = [8, 32], strides = [1, 1]} : vector<48x32xf32> to vector<8x32xf32>
    %101 = arith.addf %100, %91 : vector<8x32xf32>
    %102 = arith.negf %101 : vector<8x32xf32>
    %103 = math.exp %102 : vector<8x32xf32>
    %cst_55 = arith.constant 1.000000e+00 : f32
    %104 = vector.broadcast %cst_55 : f32 to vector<8x32xf32>
    %105 = arith.addf %104, %103 : vector<8x32xf32>
    %106 = arith.divf %104, %105 : vector<8x32xf32>
    %107 = vector.extract_strided_slice %50 {offsets = [8, 0], sizes = [8, 32], strides = [1, 1]} : vector<48x32xf32> to vector<8x32xf32>
    %108 = arith.addf %92, %56 : vector<8x32xf32>
    %109 = arith.mulf %99, %108 : vector<8x32xf32>
    %110 = arith.addf %107, %109 : vector<8x32xf32>
    %111 = math.tanh %110 : vector<8x32xf32>
    %112 = arith.subf %89, %111 : vector<8x32xf32>
    %113 = arith.mulf %106, %112 : vector<8x32xf32>
    %114 = arith.addf %111, %113 : vector<8x32xf32>
    %115 = vector.extract_strided_slice %59 {offsets = [8, 0], sizes = [8, 32], strides = [1, 1]} : vector<48x32xf32> to vector<8x32xf32>
    %cst_56 = arith.constant 0.000000e+00 : f32
    %116 = vector.broadcast %cst_56 : f32 to vector<8x32xf32>
    %117 = arith.cmpf ogt, %115, %116 : vector<8x32xf32>
    %118 = arith.select %117, %114, %89 : vector<8x32xi1>, vector<8x32xf32>
    %cst_57 = arith.constant dense<0.000000e+00> : vector<8x32xf32>
    %119 = tpu.matmul %118, %51, %cst_57 {dimension_numbers = #tpu.dot_dimension_numbers<[1], [0], [0], [1], [0, 0, 1, 1], [], []>} : vector<8x32xf32>, vector<32x32xf32>, vector<8x32xf32> -> vector<8x32xf32>
    %cst_58 = arith.constant dense<0.000000e+00> : vector<8x32xf32>
    %120 = tpu.matmul %118, %52, %cst_58 {dimension_numbers = #tpu.dot_dimension_numbers<[1], [0], [0], [1], [0, 0, 1, 1], [], []>} : vector<8x32xf32>, vector<32x32xf32>, vector<8x32xf32> -> vector<8x32xf32>
    %cst_59 = arith.constant dense<0.000000e+00> : vector<8x32xf32>
    %121 = tpu.matmul %118, %53, %cst_59 {dimension_numbers = #tpu.dot_dimension_numbers<[1], [0], [0], [1], [0, 0, 1, 1], [], []>} : vector<8x32xf32>, vector<32x32xf32>, vector<8x32xf32> -> vector<8x32xf32>
    %122 = vector.extract_strided_slice %40 {offsets = [16, 0], sizes = [8, 32], strides = [1, 1]} : vector<48x32xf32> to vector<8x32xf32>
    %123 = arith.addf %122, %119 : vector<8x32xf32>
    %124 = arith.negf %123 : vector<8x32xf32>
    %125 = math.exp %124 : vector<8x32xf32>
    %cst_60 = arith.constant 1.000000e+00 : f32
    %126 = vector.broadcast %cst_60 : f32 to vector<8x32xf32>
    %127 = arith.addf %126, %125 : vector<8x32xf32>
    %128 = arith.divf %126, %127 : vector<8x32xf32>
    %129 = vector.extract_strided_slice %45 {offsets = [16, 0], sizes = [8, 32], strides = [1, 1]} : vector<48x32xf32> to vector<8x32xf32>
    %130 = arith.addf %129, %120 : vector<8x32xf32>
    %131 = arith.negf %130 : vector<8x32xf32>
    %132 = math.exp %131 : vector<8x32xf32>
    %cst_61 = arith.constant 1.000000e+00 : f32
    %133 = vector.broadcast %cst_61 : f32 to vector<8x32xf32>
    %134 = arith.addf %133, %132 : vector<8x32xf32>
    %135 = arith.divf %133, %134 : vector<8x32xf32>
    %136 = vector.extract_strided_slice %50 {offsets = [16, 0], sizes = [8, 32], strides = [1, 1]} : vector<48x32xf32> to vector<8x32xf32>
    %137 = arith.addf %121, %56 : vector<8x32xf32>
    %138 = arith.mulf %128, %137 : vector<8x32xf32>
    %139 = arith.addf %136, %138 : vector<8x32xf32>
    %140 = math.tanh %139 : vector<8x32xf32>
    %141 = arith.subf %118, %140 : vector<8x32xf32>
    %142 = arith.mulf %135, %141 : vector<8x32xf32>
    %143 = arith.addf %140, %142 : vector<8x32xf32>
    %144 = vector.extract_strided_slice %59 {offsets = [16, 0], sizes = [8, 32], strides = [1, 1]} : vector<48x32xf32> to vector<8x32xf32>
    %cst_62 = arith.constant 0.000000e+00 : f32
    %145 = vector.broadcast %cst_62 : f32 to vector<8x32xf32>
    %146 = arith.cmpf ogt, %144, %145 : vector<8x32xf32>
    %147 = arith.select %146, %143, %118 : vector<8x32xi1>, vector<8x32xf32>
    %cst_63 = arith.constant dense<0.000000e+00> : vector<8x32xf32>
    %148 = tpu.matmul %147, %51, %cst_63 {dimension_numbers = #tpu.dot_dimension_numbers<[1], [0], [0], [1], [0, 0, 1, 1], [], []>} : vector<8x32xf32>, vector<32x32xf32>, vector<8x32xf32> -> vector<8x32xf32>
    %cst_64 = arith.constant dense<0.000000e+00> : vector<8x32xf32>
    %149 = tpu.matmul %147, %52, %cst_64 {dimension_numbers = #tpu.dot_dimension_numbers<[1], [0], [0], [1], [0, 0, 1, 1], [], []>} : vector<8x32xf32>, vector<32x32xf32>, vector<8x32xf32> -> vector<8x32xf32>
    %cst_65 = arith.constant dense<0.000000e+00> : vector<8x32xf32>
    %150 = tpu.matmul %147, %53, %cst_65 {dimension_numbers = #tpu.dot_dimension_numbers<[1], [0], [0], [1], [0, 0, 1, 1], [], []>} : vector<8x32xf32>, vector<32x32xf32>, vector<8x32xf32> -> vector<8x32xf32>
    %151 = vector.extract_strided_slice %40 {offsets = [24, 0], sizes = [8, 32], strides = [1, 1]} : vector<48x32xf32> to vector<8x32xf32>
    %152 = arith.addf %151, %148 : vector<8x32xf32>
    %153 = arith.negf %152 : vector<8x32xf32>
    %154 = math.exp %153 : vector<8x32xf32>
    %cst_66 = arith.constant 1.000000e+00 : f32
    %155 = vector.broadcast %cst_66 : f32 to vector<8x32xf32>
    %156 = arith.addf %155, %154 : vector<8x32xf32>
    %157 = arith.divf %155, %156 : vector<8x32xf32>
    %158 = vector.extract_strided_slice %45 {offsets = [24, 0], sizes = [8, 32], strides = [1, 1]} : vector<48x32xf32> to vector<8x32xf32>
    %159 = arith.addf %158, %149 : vector<8x32xf32>
    %160 = arith.negf %159 : vector<8x32xf32>
    %161 = math.exp %160 : vector<8x32xf32>
    %cst_67 = arith.constant 1.000000e+00 : f32
    %162 = vector.broadcast %cst_67 : f32 to vector<8x32xf32>
    %163 = arith.addf %162, %161 : vector<8x32xf32>
    %164 = arith.divf %162, %163 : vector<8x32xf32>
    %165 = vector.extract_strided_slice %50 {offsets = [24, 0], sizes = [8, 32], strides = [1, 1]} : vector<48x32xf32> to vector<8x32xf32>
    %166 = arith.addf %150, %56 : vector<8x32xf32>
    %167 = arith.mulf %157, %166 : vector<8x32xf32>
    %168 = arith.addf %165, %167 : vector<8x32xf32>
    %169 = math.tanh %168 : vector<8x32xf32>
    %170 = arith.subf %147, %169 : vector<8x32xf32>
    %171 = arith.mulf %164, %170 : vector<8x32xf32>
    %172 = arith.addf %169, %171 : vector<8x32xf32>
    %173 = vector.extract_strided_slice %59 {offsets = [24, 0], sizes = [8, 32], strides = [1, 1]} : vector<48x32xf32> to vector<8x32xf32>
    %cst_68 = arith.constant 0.000000e+00 : f32
    %174 = vector.broadcast %cst_68 : f32 to vector<8x32xf32>
    %175 = arith.cmpf ogt, %173, %174 : vector<8x32xf32>
    %176 = arith.select %175, %172, %147 : vector<8x32xi1>, vector<8x32xf32>
    %cst_69 = arith.constant dense<0.000000e+00> : vector<8x32xf32>
    %177 = tpu.matmul %176, %51, %cst_69 {dimension_numbers = #tpu.dot_dimension_numbers<[1], [0], [0], [1], [0, 0, 1, 1], [], []>} : vector<8x32xf32>, vector<32x32xf32>, vector<8x32xf32> -> vector<8x32xf32>
    %cst_70 = arith.constant dense<0.000000e+00> : vector<8x32xf32>
    %178 = tpu.matmul %176, %52, %cst_70 {dimension_numbers = #tpu.dot_dimension_numbers<[1], [0], [0], [1], [0, 0, 1, 1], [], []>} : vector<8x32xf32>, vector<32x32xf32>, vector<8x32xf32> -> vector<8x32xf32>
    %cst_71 = arith.constant dense<0.000000e+00> : vector<8x32xf32>
    %179 = tpu.matmul %176, %53, %cst_71 {dimension_numbers = #tpu.dot_dimension_numbers<[1], [0], [0], [1], [0, 0, 1, 1], [], []>} : vector<8x32xf32>, vector<32x32xf32>, vector<8x32xf32> -> vector<8x32xf32>
    %180 = vector.extract_strided_slice %40 {offsets = [32, 0], sizes = [8, 32], strides = [1, 1]} : vector<48x32xf32> to vector<8x32xf32>
    %181 = arith.addf %180, %177 : vector<8x32xf32>
    %182 = arith.negf %181 : vector<8x32xf32>
    %183 = math.exp %182 : vector<8x32xf32>
    %cst_72 = arith.constant 1.000000e+00 : f32
    %184 = vector.broadcast %cst_72 : f32 to vector<8x32xf32>
    %185 = arith.addf %184, %183 : vector<8x32xf32>
    %186 = arith.divf %184, %185 : vector<8x32xf32>
    %187 = vector.extract_strided_slice %45 {offsets = [32, 0], sizes = [8, 32], strides = [1, 1]} : vector<48x32xf32> to vector<8x32xf32>
    %188 = arith.addf %187, %178 : vector<8x32xf32>
    %189 = arith.negf %188 : vector<8x32xf32>
    %190 = math.exp %189 : vector<8x32xf32>
    %cst_73 = arith.constant 1.000000e+00 : f32
    %191 = vector.broadcast %cst_73 : f32 to vector<8x32xf32>
    %192 = arith.addf %191, %190 : vector<8x32xf32>
    %193 = arith.divf %191, %192 : vector<8x32xf32>
    %194 = vector.extract_strided_slice %50 {offsets = [32, 0], sizes = [8, 32], strides = [1, 1]} : vector<48x32xf32> to vector<8x32xf32>
    %195 = arith.addf %179, %56 : vector<8x32xf32>
    %196 = arith.mulf %186, %195 : vector<8x32xf32>
    %197 = arith.addf %194, %196 : vector<8x32xf32>
    %198 = math.tanh %197 : vector<8x32xf32>
    %199 = arith.subf %176, %198 : vector<8x32xf32>
    %200 = arith.mulf %193, %199 : vector<8x32xf32>
    %201 = arith.addf %198, %200 : vector<8x32xf32>
    %202 = vector.extract_strided_slice %59 {offsets = [32, 0], sizes = [8, 32], strides = [1, 1]} : vector<48x32xf32> to vector<8x32xf32>
    %cst_74 = arith.constant 0.000000e+00 : f32
    %203 = vector.broadcast %cst_74 : f32 to vector<8x32xf32>
    %204 = arith.cmpf ogt, %202, %203 : vector<8x32xf32>
    %205 = arith.select %204, %201, %176 : vector<8x32xi1>, vector<8x32xf32>
    %cst_75 = arith.constant dense<0.000000e+00> : vector<8x32xf32>
    %206 = tpu.matmul %205, %51, %cst_75 {dimension_numbers = #tpu.dot_dimension_numbers<[1], [0], [0], [1], [0, 0, 1, 1], [], []>} : vector<8x32xf32>, vector<32x32xf32>, vector<8x32xf32> -> vector<8x32xf32>
    %cst_76 = arith.constant dense<0.000000e+00> : vector<8x32xf32>
    %207 = tpu.matmul %205, %52, %cst_76 {dimension_numbers = #tpu.dot_dimension_numbers<[1], [0], [0], [1], [0, 0, 1, 1], [], []>} : vector<8x32xf32>, vector<32x32xf32>, vector<8x32xf32> -> vector<8x32xf32>
    %cst_77 = arith.constant dense<0.000000e+00> : vector<8x32xf32>
    %208 = tpu.matmul %205, %53, %cst_77 {dimension_numbers = #tpu.dot_dimension_numbers<[1], [0], [0], [1], [0, 0, 1, 1], [], []>} : vector<8x32xf32>, vector<32x32xf32>, vector<8x32xf32> -> vector<8x32xf32>
    %209 = vector.extract_strided_slice %40 {offsets = [40, 0], sizes = [8, 32], strides = [1, 1]} : vector<48x32xf32> to vector<8x32xf32>
    %210 = arith.addf %209, %206 : vector<8x32xf32>
    %211 = arith.negf %210 : vector<8x32xf32>
    %212 = math.exp %211 : vector<8x32xf32>
    %cst_78 = arith.constant 1.000000e+00 : f32
    %213 = vector.broadcast %cst_78 : f32 to vector<8x32xf32>
    %214 = arith.addf %213, %212 : vector<8x32xf32>
    %215 = arith.divf %213, %214 : vector<8x32xf32>
    %216 = vector.extract_strided_slice %45 {offsets = [40, 0], sizes = [8, 32], strides = [1, 1]} : vector<48x32xf32> to vector<8x32xf32>
    %217 = arith.addf %216, %207 : vector<8x32xf32>
    %218 = arith.negf %217 : vector<8x32xf32>
    %219 = math.exp %218 : vector<8x32xf32>
    %cst_79 = arith.constant 1.000000e+00 : f32
    %220 = vector.broadcast %cst_79 : f32 to vector<8x32xf32>
    %221 = arith.addf %220, %219 : vector<8x32xf32>
    %222 = arith.divf %220, %221 : vector<8x32xf32>
    %223 = vector.extract_strided_slice %50 {offsets = [40, 0], sizes = [8, 32], strides = [1, 1]} : vector<48x32xf32> to vector<8x32xf32>
    %224 = arith.addf %208, %56 : vector<8x32xf32>
    %225 = arith.mulf %215, %224 : vector<8x32xf32>
    %226 = arith.addf %223, %225 : vector<8x32xf32>
    %227 = math.tanh %226 : vector<8x32xf32>
    %228 = arith.subf %205, %227 : vector<8x32xf32>
    %229 = arith.mulf %222, %228 : vector<8x32xf32>
    %230 = arith.addf %227, %229 : vector<8x32xf32>
    %231 = vector.extract_strided_slice %59 {offsets = [40, 0], sizes = [8, 32], strides = [1, 1]} : vector<48x32xf32> to vector<8x32xf32>
    %cst_80 = arith.constant 0.000000e+00 : f32
    %232 = vector.broadcast %cst_80 : f32 to vector<8x32xf32>
    %233 = arith.cmpf ogt, %231, %232 : vector<8x32xf32>
    %234 = arith.select %233, %230, %205 : vector<8x32xi1>, vector<8x32xf32>
    %235 = vector.extract_strided_slice %234 {offsets = [0, 0], sizes = [2, 32], strides = [1, 1]} : vector<8x32xf32> to vector<2x32xf32>
    %c288 = arith.constant 288 : index
    %c0_81 = arith.constant 0 : index
    %236 = vector.load %arg5[%c288, %c0_81] : memref<416x32xf32, #tpu.memory_space<vmem>>, vector<32x32xf32>
    %cst_82 = arith.constant dense<0.000000e+00> : vector<2x32xf32>
    %237 = tpu.matmul %34, %236, %cst_82 {dimension_numbers = #tpu.dot_dimension_numbers<[1], [0], [0], [1], [0, 0, 1, 1], [], []>} : vector<2x32xf32>, vector<32x32xf32>, vector<2x32xf32> -> vector<2x32xf32>
    %c320 = arith.constant 320 : index
    %c0_83 = arith.constant 0 : index
    %238 = vector.load %arg5[%c320, %c0_83] : memref<416x32xf32, #tpu.memory_space<vmem>>, vector<32x32xf32>
    %cst_84 = arith.constant dense<0.000000e+00> : vector<2x32xf32>
    %239 = tpu.matmul %235, %238, %cst_84 {dimension_numbers = #tpu.dot_dimension_numbers<[1], [0], [0], [1], [0, 0, 1, 1], [], []>} : vector<2x32xf32>, vector<32x32xf32>, vector<2x32xf32> -> vector<2x32xf32>
    %240 = arith.addf %237, %239 : vector<2x32xf32>
    %c7 = arith.constant 7 : index
    %c0_85 = arith.constant 0 : index
    %241 = vector.load %arg6[%c7, %c0_85] : memref<10x32xf32, #tpu.memory_space<vmem>>, vector<1x32xf32>
    %242 = vector.broadcast %241 : vector<1x32xf32> to vector<2x32xf32>
    %243 = arith.addf %240, %242 : vector<2x32xf32>
    %cst_86 = arith.constant 0.000000e+00 : f32
    %244 = vector.broadcast %cst_86 : f32 to vector<2x32xf32>
    %245 = arith.maximumf %243, %244 : vector<2x32xf32>
    %c352 = arith.constant 352 : index
    %c0_87 = arith.constant 0 : index
    %246 = vector.load %arg5[%c352, %c0_87] : memref<416x32xf32, #tpu.memory_space<vmem>>, vector<32x32xf32>
    %cst_88 = arith.constant dense<0.000000e+00> : vector<2x32xf32>
    %247 = tpu.matmul %245, %246, %cst_88 {dimension_numbers = #tpu.dot_dimension_numbers<[1], [0], [0], [1], [0, 0, 1, 1], [], []>} : vector<2x32xf32>, vector<32x32xf32>, vector<2x32xf32> -> vector<2x32xf32>
    %c8_89 = arith.constant 8 : index
    %c0_90 = arith.constant 0 : index
    %248 = vector.load %arg6[%c8_89, %c0_90] : memref<10x32xf32, #tpu.memory_space<vmem>>, vector<1x32xf32>
    %249 = vector.broadcast %248 : vector<1x32xf32> to vector<2x32xf32>
    %250 = arith.addf %247, %249 : vector<2x32xf32>
    %cst_91 = arith.constant 0.000000e+00 : f32
    %251 = vector.broadcast %cst_91 : f32 to vector<2x32xf32>
    %252 = arith.maximumf %250, %251 : vector<2x32xf32>
    %c384 = arith.constant 384 : index
    %c0_92 = arith.constant 0 : index
    %253 = vector.load %arg5[%c384, %c0_92] : memref<416x32xf32, #tpu.memory_space<vmem>>, vector<32x32xf32>
    %cst_93 = arith.constant dense<0.000000e+00> : vector<2x32xf32>
    %254 = tpu.matmul %252, %253, %cst_93 {dimension_numbers = #tpu.dot_dimension_numbers<[1], [0], [0], [1], [0, 0, 1, 1], [], []>} : vector<2x32xf32>, vector<32x32xf32>, vector<2x32xf32> -> vector<2x32xf32>
    %c9 = arith.constant 9 : index
    %c0_94 = arith.constant 0 : index
    %255 = vector.load %arg6[%c9, %c0_94] : memref<10x32xf32, #tpu.memory_space<vmem>>, vector<1x32xf32>
    %256 = vector.broadcast %255 : vector<1x32xf32> to vector<2x32xf32>
    %257 = arith.addf %254, %256 : vector<2x32xf32>
    %258 = vector.extract_strided_slice %257 {offsets = [0, 0], sizes = [2, 4], strides = [1, 1]} : vector<2x32xf32> to vector<2x4xf32>
    %c0_95 = arith.constant 0 : index
    %c0_96 = arith.constant 0 : index
    %259 = vector.load %arg7[%c0_95, %c0_96] : memref<2x4xf32, #tpu.memory_space<vmem>>, vector<2x4xf32>
    tpu.vector_store %arg7[%c0_95, %c0_96], %258 {strides = array<i32>} : memref<2x4xf32, #tpu.memory_space<vmem>>, vector<2x4xf32>,
    return
  }
}

</mosaic_0001>

<bundles_post_ra>
// kernel: tpu_custom_call.1
= control target key start
LH: loop header
LB: loop body
LE: loop exit
PB: predicated region body
PF: predicated region fallthrough
CT: control target
= control target key end

     0   :  { %vm31_vm0 = vcmask 130048   ;;  %vm115_vm1 = vcmask 64512   ;;  %s4389_s0 = inlined_call_operand.vmem [shape: f32[16,16], index: 0, kind: input, shape index: {}]   ;;  %s4390_s1 = inlined_call_operand.vmem [shape: f32[16,8], index: 1, kind: input, shape index: {}]   ;;  %s4391_s2 = inlined_call_operand.vmem [shape: f32[2,16], index: 2, kind: input, shape index: {}]   ;;  %s4392_s3 = inlined_call_operand.vmem [shape: f32[48,16], index: 3, kind: input, shape index: {}]   ;;  %s4393_s4 = inlined_call_operand.vmem [shape: f32[48,1], index: 4, kind: input, shape index: {}]   ;;  %s4394_s5 = inlined_call_operand.vmem [shape: f32[416,32], index: 5, kind: input, shape index: {}]   ;;  %s4395_s6 = inlined_call_operand.vmem [shape: f32[10,32], index: 6, kind: input, shape index: {}]   ;;  %s4396_s7 = inlined_call_operand.hbm [shape: f32[2,4], index: 7, kind: output, shape index: {}]  }
   0x1   :  { %v30_v0 = vld [vmem:[%s4390_s1 + $0x8] sm:$0xff]  ;;  %v29_v1 = vld [vmem:[%s4390_s1] sm:$0xff] }
   0x2   :  { %v27_v2 = vld [vmem:[%s4389_s0] sm:$0xff]  ;;  %3258 = vmatprep.subr.mxu0 %v30_v0  ;;  %v114_v3 = vld [vmem:[%s4394_s5 + $0x8] sm:$0xff] }
   0x3   :  { %3262 = vmatprep.mubr.msk.f32.mxu0 %vm31_vm0, %v27_v2 }
   0x4   :  { %12 = vsyncpa [#allocation3], 0  ;;  %3259 = vmatpush3.msra.mxu0 %v30_v0  ;;  %v3769_v4 = vld [vmem:[%s4389_s0 + $0x8] sm:$0xff]  ;;  %3265 = vmatprep.subr.mxu1 %v114_v3  ;;  %v113_v5 = vld [vmem:[%s4394_s5] sm:$0xff]  ;;  %vm370_vm2 = vcmask 261120   ;;  %v3709_v50 = vmov 0.0  }
   0x5   :  { %3260 = vmatprep.subr.mxu0 %v29_v1  ;;  %3266 = vmatpush3.msra.mxu1 %v114_v3  ;;  %v365_v8 = vld [vmem:[%s4394_s5 + $0x28] sm:$0xff]  ;;  %v364_v9 = vld [vmem:[%s4394_s5 + $0x20] sm:$0xff]  ;;  %v367_v23 = vld [vmem:[%s4394_s5 + $0x38] sm:$0xff]  ;;  %vm3710_vm3 = vmmov 0   ;;  %v3711_v61 = vmov 0   ;;  %s3712_s23 = smov [#allocation2]  }
   0x6   :  { %3261 = vmatpush3.msra.mxu0 %v29_v1  ;;  %3267 = vmatprep.mubr.msk.f32.mxu1 %vm115_vm1, %v29_v1  ;;  %v3007_v13 = vld [vmem:[%s4395_s6] ss:$0 sm:$0xff]  ;;  %v369_v21 = vld [vmem:[%s4394_s5 + $0x48] sm:$0xff]  ;;  %v366_v24 = vld [vmem:[%s4394_s5 + $0x30] sm:$0xff]  ;;  %s2993_s24 = sshll.u32 %s3712_s23, 4  ;;  %vm2985_vm10 = vcmask 25600   ;;  %s2994_s24 = int_to_ptr.vmem [resolvable:$true] %s2993_s24 }
   0x7   :  { %3263 = vmatmul.mubr.msk.f32.vlgmr.msra.gmra.mxu0 %vm31_vm0, %v3769_v4  ;;  %3268 = vmatmul.mubr.msk.f32.vlgmr.msra.gmra.mxu1 %vm115_vm1, %v30_v0  ;;  %v368_v22 = vld [vmem:[%s4394_s5 + $0x40] sm:$0xff]  ;;  %v363_v25 = vld [vmem:[%s4394_s5 + $0x18] sm:$0xff]  ;;  %v362_v26 = vld [vmem:[%s4394_s5 + $0x10] sm:$0xff]  ;;  %p3692_p1 = scmp.lt.s32.totalorder %s2994_s24, %s2994_s24 }
   0x8   :  { %3270 = vmatprep.subr.mxu1 %v113_v5  ;;  %3293 = vmatprep.subr.mxu0 %v365_v8  ;;  %v624_v29 = vld [vmem:[%s4394_s5 + $0x88] sm:$0xff]  ;;  %v623_v30 = vld [vmem:[%s4394_s5 + $0x80] sm:$0xff]  ;;  %v622_v31 = vld [vmem:[%s4394_s5 + $0x78] sm:$0xff] }
   0x9   :  { %3271 = vmatpush3.msra.mxu1 %v113_v5  ;;  %3294 = vmatpush3.msra.mxu0 %v365_v8  ;;  %v621_v32 = vld [vmem:[%s4394_s5 + $0x70] sm:$0xff]  ;;  %v3014_v35 = vld [vmem:[%s4395_s6 + $0x1] ss:$0 sm:$0xff]  ;;  %v620_v44 = vld [vmem:[%s4394_s5 + $0x68] sm:$0xff] }
   0xa   :  { %3295 = vmatprep.subr.mxu0 %v364_v9  ;;  %v619_v45 = vld [vmem:[%s4394_s5 + $0x60] sm:$0xff]  ;;  %v618_v46 = vld [vmem:[%s4394_s5 + $0x58] sm:$0xff]  ;;  %v617_v47 = vld [vmem:[%s4394_s5 + $0x50] sm:$0xff]  ;;  %3625 = vset.pattern.permute.xlu0 %v3711_v61 }
   0xb   :  { %3296 = vmatpush3.msra.mxu0 %v364_v9  ;;  %v3854_v51 = vld [vmem:[%s4392_s3] sm:$0xff]  ;;  %v873_v52 = vld [vmem:[%s4394_s5 + $0x98] sm:$0xff]  ;;  %v872_v53 = vld [vmem:[%s4394_s5 + $0x90] sm:$0xff]  ;;  %3626 = vset.pattern.permute.xlu1 %v3711_v61 }
   0xc   :  { %3297 = vmatprep.subr.mxu0 %v363_v25  ;;  %v3867_v54 = vld [vmem:[%s4392_s3 + $0x8] sm:$0xff]  ;;  %v3872_v55 = vld [vmem:[%s4392_s3 + $0x10] sm:$0xff]  ;;  %v3881_v56 = vld [vmem:[%s4392_s3 + $0x18] sm:$0xff] }
   0xd   :  { %3298 = vmatpush3.msra.mxu0 %v363_v25  ;;  %v3886_v57 = vld [vmem:[%s4392_s3 + $0x20] sm:$0xff]  ;;  %v3895_v58 = vld [vmem:[%s4392_s3 + $0x28] sm:$0xff]  ;;  %v1095_v59 = vld [vmem:[%s4394_s5 + $0xb8] sm:$0xff] }
   0xe   :  { %3299 = vmatprep.subr.mxu0 %v362_v26  ;;  %v1094_v60 = vld [vmem:[%s4394_s5 + $0xb0] sm:$0xff]  ;;  %v1213_v62 = vld [vmem:[%s4393_s4] sm:$0xff]  ;;  %v3913_v63 = vld [vmem:[%s4394_s5 + $0x118] sm:$0xff] }
   0xf   :  { %3300 = vmatpush3.msra.mxu0 %v362_v26  ;;  %1454 = vperm.xlu0 %3625, %v1213_v62   ;;  %v1214_v0 = vld [vmem:[%s4393_s4 + $0x8] sm:$0xff]  ;;  %v3924_v1 = vld [vmem:[%s4394_s5 + $0x110] sm:$0xff]  ;;  %v1217_v3 = vld [vmem:[%s4393_s4 + $0x20] sm:$0xff] }
  0x10   :  { %3311 = vmatprep.subr.mxu0 %v624_v29  ;;  %v3960_v5 = vld [vmem:[%s4394_s5 + $0xf8] sm:$0xff]  ;;  %v3983_v8 = vld [vmem:[%s4394_s5 + $0xe0] sm:$0xff] }
  0x13   :  { %1694 = vperm.xlu0 %3625, %v1214_v0  }
  0x17   :  { %2414 = vperm.xlu0 %3625, %v1217_v3  }
  0xc7   :  { %v3264_v6 = vpop.f32.mrf.mxu0  ;;  %v3269_v10 = vpop.f32.mrf.mxu1 }
  0xc9   :  { %v104_v7 = vpop.f32.mrf.mxu0  ;;  %v188_v11 = vpop.f32.mrf.mxu1 }
  0xca   :  { %3272 = vmatprep.mubr.msk.f32.mxu1 %vm115_vm1, %v104_v7  ;;  %v3976_v7 = vld [vmem:[%s4394_s5 + $0xe8] sm:$0xff] }
  0xcb   :  { %3273 = vmatmul.mubr.msk.f32.vlgmr.msra.gmra.mxu1 %vm115_vm1, %v3264_v6  ;;  %v3969_v6 = vld [vmem:[%s4394_s5 + $0xf0] sm:$0xff] }
  0xcc   :  { %3279 = vmatprep.mubr.msk.f32.mxu1 %vm31_vm0, %v27_v2 }
 0x18b   :  { %v3274_v12 = vpop.f32.mrf.mxu1 }
 0x18c   :  { %v275_v14 = vadd.f32 %v3274_v12, %v3269_v10 }
 0x18d   :  { %v269_v15 = vpop.f32.mrf.mxu1 }
 0x18e   :  { %v284_v16 = vadd.f32 %v3007_v13, %v275_v14  ;;  %v270_v17 = vadd.f32 %v269_v15, %v188_v11  ;;  %v787_v15 = vld [vmem:[%s4391_s2] sm:$0x3] }
 0x190   :  { %v286_v18 = vmax.f32 %v284_v16, 0.0  ;;  %v283_v19 = vadd.f32 %v3007_v13, %v270_v17  ;;  %v993_v16 = vld [vmem:[%s4394_s5 + $0xa8] sm:$0xff]  ;;  %v992_v17 = vld [vmem:[%s4394_s5 + $0xa0] sm:$0xff] }
 0x192   :  { %v285_v20 = vmax.f32 %v283_v19, 0.0  ;;  %3275 = vmatprep.subr.mxu1 %v286_v18  ;;  %v4012_v19 = vld [vmem:[%s4394_s5 + $0xd0] sm:$0xff] }
 0x193   :  { %3276 = vmatpush3.msra.mxu1 %v286_v18 }
 0x194   :  { %3277 = vmatprep.subr.mxu1 %v285_v20 }
 0x195   :  { %3278 = vmatpush3.msra.mxu1 %v285_v20 }
 0x196   :  { %3280 = vmatmul.mubr.msk.f32.vlgmr.msra.gmra.mxu1 %vm31_vm0, %v3769_v4  ;;  %3282 = vmatprep.subr.mxu1 %v369_v21 }
 0x197   :  { %3283 = vmatpush3.msra.mxu1 %v369_v21  ;;  %3290 = vmatprep.mubr.msk.f32.mxu1 %vm370_vm2, %v285_v20  ;;  %v4021_v20 = vld [vmem:[%s4394_s5 + $0xc8] sm:$0xff]  ;;  %v4030_v21 = vld [vmem:[%s4394_s5 + $0xc0] sm:$0xff] }
 0x198   :  { %3284 = vmatprep.subr.mxu1 %v368_v22 }
 0x199   :  { %3285 = vmatpush3.msra.mxu1 %v368_v22 }
 0x19a   :  { %3286 = vmatprep.subr.mxu1 %v367_v23 }
 0x19b   :  { %3287 = vmatpush3.msra.mxu1 %v367_v23  ;;  %v3023_v23 = vld [vmem:[%s4395_s6 + $0x3] ss:$0 sm:$0xff] }
 0x19c   :  { %3288 = vmatprep.subr.mxu1 %v366_v24 }
 0x19d   :  { %3289 = vmatpush3.msra.mxu1 %v366_v24 }
 0x19e   :  { %3291 = vmatmul.mubr.msk.f32.vlgmr.msra.gmra.mxu1 %vm370_vm2, %v286_v18  ;;  %v4004_v18 = vld [vmem:[%s4394_s5 + $0xd8] sm:$0xff] }
 0x19f   :  { %3308 = vmatprep.mubr.msk.f32.mxu1 %vm31_vm0, %v27_v2  ;;  %v3933_v2 = vld [vmem:[%s4394_s5 + $0x108] sm:$0xff] }
 0x256   :  { %v3281_v27 = vpop.f32.mrf.mxu1 }
 0x258   :  { %v353_v28 = vpop.f32.mrf.mxu1 }
 0x259   :  { %3301 = vmatprep.mubr.msk.f32.mxu0 %vm370_vm2, %v353_v28 }
 0x25a   :  { %3302 = vmatmul.mubr.msk.f32.vlgmr.msra.gmra.mxu0 %vm370_vm2, %v3281_v27 }
 0x25b   :  { %3312 = vmatpush3.msra.mxu0 %v624_v29 }
 0x25c   :  { %3313 = vmatprep.subr.mxu0 %v623_v30 }
 0x25d   :  { %3314 = vmatpush3.msra.mxu0 %v623_v30 }
 0x25e   :  { %3315 = vmatprep.subr.mxu0 %v622_v31  ;;  %v3292_v33 = vpop.f32.mrf.mxu1 }
 0x25f   :  { %3316 = vmatpush3.msra.mxu0 %v622_v31 }
 0x260   :  { %3317 = vmatprep.subr.mxu0 %v621_v32  ;;  %v443_v37 = vpop.f32.mrf.mxu1 }
 0x261   :  { %3318 = vmatpush3.msra.mxu0 %v621_v32 }
 0x262   :  { %3333 = vmatprep.subr.mxu0 %v3709_v50 }
 0x31a   :  { %v3303_v34 = vpop.f32.mrf.mxu0 }
 0x31b   :  { %v530_v36 = vadd.f32 %v3303_v34, %v3292_v33 }
 0x31c   :  { %v524_v38 = vpop.f32.mrf.mxu0 }
 0x31d   :  { %v539_v39 = vadd.f32 %v3014_v35, %v530_v36  ;;  %v525_v40 = vadd.f32 %v524_v38, %v443_v37 }
 0x31f   :  { %v541_v41 = vmax.f32 %v539_v39, 0.0  ;;  %v538_v42 = vadd.f32 %v3014_v35, %v525_v40  ;;  %v3037_v35 = vld [vmem:[%s4395_s6 + $0x5] ss:$0 sm:$0xff] }
 0x321   :  { %v540_v43 = vmax.f32 %v538_v42, 0.0  ;;  %3304 = vmatprep.subr.mxu1 %v541_v41 }
 0x322   :  { %3305 = vmatpush3.msra.mxu1 %v541_v41 }
 0x323   :  { %3306 = vmatprep.subr.mxu1 %v540_v43  ;;  %3319 = vmatprep.mubr.msk.f32.mxu0 %vm370_vm2, %v540_v43 }
 0x324   :  { %3307 = vmatpush3.msra.mxu1 %v540_v43  ;;  %3320 = vmatmul.mubr.msk.f32.vlgmr.msra.gmra.mxu0 %vm370_vm2, %v541_v41 }
 0x325   :  { %3309 = vmatmul.mubr.msk.f32.vlgmr.msra.gmra.mxu1 %vm31_vm0, %v3769_v4  ;;  %3322 = vmatprep.subr.mxu1 %v620_v44  ;;  %v3945_v4 = vld [vmem:[%s4394_s5 + $0x100] sm:$0xff] }
 0x326   :  { %3323 = vmatpush3.msra.mxu1 %v620_v44  ;;  %3337 = vmatprep.mubr.msk.f32.mxu0 %vm3710_vm3, %v3709_v50 }
 0x327   :  { %3324 = vmatprep.subr.mxu1 %v619_v45 }
 0x328   :  { %3325 = vmatpush3.msra.mxu1 %v619_v45 }
 0x329   :  { %3326 = vmatprep.subr.mxu1 %v618_v46 }
 0x32a   :  { %3327 = vmatpush3.msra.mxu1 %v618_v46 }
 0x32b   :  { %3328 = vmatprep.subr.mxu1 %v617_v47 }
 0x32c   :  { %3329 = vmatpush3.msra.mxu1 %v617_v47 }
 0x32d   :  { %3340 = vmatprep.subr.mxu1 %v873_v52 }
 0x3e4   :  { %v3321_v9 = vpop.f32.mrf.mxu0 }
 0x3e5   :  { %v3310_v48 = vpop.f32.mrf.mxu1 }
 0x3e6   :  { %v697_v12 = vpop.f32.mrf.mxu0 }
 0x3e7   :  { %v608_v49 = vpop.f32.mrf.mxu1 }
 0x3e8   :  { %3330 = vmatprep.mubr.msk.f32.mxu1 %vm370_vm2, %v608_v49 }
 0x3e9   :  { %3331 = vmatmul.mubr.msk.f32.vlgmr.msra.gmra.mxu1 %vm370_vm2, %v3310_v48 }
 0x3ea   :  { %3344 = vmatprep.mubr.msk.f32.mxu1 %vm31_vm0, %v3854_v51  ;;  %3341 = vmatpush3.msra.mxu1 %v873_v52 }
 0x3eb   :  { %3342 = vmatprep.subr.mxu1 %v872_v53 }
 0x3ec   :  { %3343 = vmatpush3.msra.mxu1 %v872_v53 }
 0x3ed   :  { %3345 = vmatmul.mubr.msk.f32.vlgmr.msra.gmra.mxu1 %vm31_vm0, %v3867_v54  ;;  %3366 = vmatprep.subr.mxu1 %v1095_v59 }
 0x3ee   :  { %3347 = vmatprep.mubr.msk.f32.mxu1 %vm31_vm0, %v3872_v55  ;;  %3367 = vmatpush3.msra.mxu1 %v1095_v59 }
 0x3ef   :  { %3368 = vmatprep.subr.mxu1 %v1094_v60 }
 0x3f0   :  { %3369 = vmatpush3.msra.mxu1 %v1094_v60 }
 0x3f1   :  { %3348 = vmatmul.mubr.msk.f32.gmra.mxu1 %vm31_vm0, %v3881_v56  ;;  %3401 = vmatprep.subr.mxu1 %v3709_v50 }
 0x3f2   :  { %3350 = vmatprep.mubr.msk.f32.mxu1 %vm31_vm0, %v3886_v57 }
 0x3f5   :  { %3351 = vmatmul.mubr.msk.f32.gmra.mxu1 %vm31_vm0, %v3895_v58 }
 0x3f6   :  { %3370 = vmatprep.mubr.msk.f32.mxu1 %vm31_vm0, %v3854_v51 }
 0x3f9   :  { %3371 = vmatmul.mubr.msk.f32.vlgmr.msra.gmra.mxu1 %vm31_vm0, %v3867_v54 }
 0x3fa   :  { %3402 = vmatpush3.msra.mxu1 %v3913_v63  ;;  %3373 = vmatprep.mubr.msk.f32.mxu1 %vm31_vm0, %v3872_v55 }
 0x3fb   :  { %3403 = vmatprep.subr.mxu1 %v3709_v50 }
 0x3fc   :  { %3404 = vmatpush3.msra.mxu1 %v3924_v1 }
 0x3fd   :  { %3374 = vmatmul.mubr.msk.f32.gmra.mxu1 %vm31_vm0, %v3881_v56  ;;  %3405 = vmatprep.subr.mxu1 %v3709_v50 }
 0x3fe   :  { %3376 = vmatprep.mubr.msk.f32.mxu1 %vm31_vm0, %v3886_v57  ;;  %3406 = vmatpush3.msra.mxu1 %v3933_v2 }
 0x3ff   :  { %3407 = vmatprep.subr.mxu1 %v3709_v50 }
 0x400   :  { %3408 = vmatpush3.msra.mxu1 %v3945_v4 }
 0x401   :  { %3377 = vmatmul.mubr.msk.f32.gmra.mxu1 %vm31_vm0, %v3895_v58  ;;  %3423 = vmatprep.subr.mxu1 %v3709_v50 }
 0x402   :  { %3409 = vmatprep.mubr.msk.f32.mxu1 %vm3710_vm3, %v3709_v50 }
 0x405   :  { %3410 = vmatmul.mubr.f32.vlgmr.msra.gmra.mxu1 %v3709_v50 }
 0x406   :  { %3424 = vmatpush3.msra.mxu1 %v3960_v5  ;;  %3431 = vmatprep.mubr.msk.f32.mxu1 %vm3710_vm3, %v3709_v50 }
 0x407   :  { %3425 = vmatprep.subr.mxu1 %v3709_v50 }
 0x408   :  { %3426 = vmatpush3.msra.mxu1 %v3969_v6 }
 0x409   :  { %3427 = vmatprep.subr.mxu1 %v3709_v50 }
 0x40a   :  { %3428 = vmatpush3.msra.mxu1 %v3976_v7 }
 0x40b   :  { %3429 = vmatprep.subr.mxu1 %v3709_v50 }
 0x40c   :  { %3430 = vmatpush3.msra.mxu1 %v3983_v8 }
 0x40d   :  { %3445 = vmatprep.subr.mxu1 %v3709_v50 }
 0x4a9   :  { %v3332_v10 = vpop.f32.mrf.mxu1 }
 0x4aa   :  { %v784_v11 = vadd.f32 %v3332_v10, %v3321_v9 }
 0x4ab   :  { %v778_v13 = vpop.f32.mrf.mxu1 }
 0x4ac   :  { %v779_v14 = vadd.f32 %v778_v13, %v697_v12  ;;  %3334 = vmatpush3.msra.mxu0 %v784_v11 }
 0x4ad   :  { %3335 = vmatprep.subr.mxu0 %v3709_v50  ;;  %v3346_v22 = vpop.f32.mrf.mxu1 }
 0x4ae   :  { %3336 = vmatpush3.msra.mxu0 %v779_v14  ;;  %v4067_v24 = vadd.f32 %v3346_v22, %v3023_v23 }
 0x4af   :  { %3338 = vmatmul.mubr.msk.f32.vlgmr.msra.gmra.mxu0 %vm31_vm0, %v787_v15  ;;  %3353 = vmatprep.subr.mxu0 %v993_v16  ;;  %v963_v25 = vpop.f32.mrf.mxu1 }
 0x4b0   :  { %3354 = vmatpush3.msra.mxu0 %v993_v16  ;;  %3357 = vmatprep.mubr.msk.f32.mxu0 %vm31_vm0, %v3854_v51  ;;  %v3030_v51 = vld [vmem:[%s4395_s6 + $0x4] ss:$0 sm:$0xff]  ;;  %v964_v62 = vadd.f32 %v3023_v23, %v963_v25 }
 0x4b1   :  { %3355 = vmatprep.subr.mxu0 %v992_v17  ;;  %v3349_v26 = vpop.f32.mrf.mxu1 }
 0x4b2   :  { %3356 = vmatpush3.msra.mxu0 %v992_v17  ;;  %v4069_v28 = vadd.f32 %v3349_v26, %v3023_v23 }
 0x4b3   :  { %3358 = vmatmul.mubr.msk.f32.vlgmr.msra.gmra.mxu0 %vm31_vm0, %v3867_v54  ;;  %3379 = vmatprep.subr.mxu0 %v3709_v50  ;;  %v973_v27 = vpop.f32.mrf.mxu1 }
 0x4b4   :  { %3380 = vmatpush3.msra.mxu0 %v4004_v18  ;;  %3360 = vmatprep.mubr.msk.f32.mxu0 %vm31_vm0, %v3872_v55  ;;  %v4071_v29 = vadd.f32 %v3023_v23, %v973_v27 }
 0x4b5   :  { %3381 = vmatprep.subr.mxu0 %v3709_v50  ;;  %v3352_v30 = vpop.f32.mrf.mxu1 }
 0x4b6   :  { %3382 = vmatpush3.msra.mxu0 %v4012_v19  ;;  %v4073_v32 = vadd.f32 %v3352_v30, %v3023_v23 }
 0x4b7   :  { %3361 = vmatmul.mubr.msk.f32.gmra.mxu0 %vm31_vm0, %v3881_v56  ;;  %3383 = vmatprep.subr.mxu0 %v3709_v50  ;;  %v983_v31 = vpop.f32.mrf.mxu1 }
 0x4b8   :  { %3363 = vmatprep.mubr.msk.f32.mxu0 %vm31_vm0, %v3886_v57  ;;  %3384 = vmatpush3.msra.mxu0 %v4021_v20  ;;  %v4075_v33 = vadd.f32 %v3023_v23, %v983_v31  ;;  %v4108_v23 = vld [vmem:[%s4395_s6 + $0x6] ss:$0 sm:$0xff] }
 0x4b9   :  { %3385 = vmatprep.subr.mxu0 %v3709_v50  ;;  %v3372_v34 = vpop.f32.mrf.mxu1 }
 0x4ba   :  { %3386 = vmatpush3.msra.mxu0 %v4030_v21  ;;  %v4080_v37 = vadd.f32 %v3372_v34, %v3037_v35 }
 0x4bb   :  { %3364 = vmatmul.mubr.msk.f32.gmra.mxu0 %vm31_vm0, %v3895_v58  ;;  %3390 = vmatprep.subr.mxu0 %v3709_v50  ;;  %v1167_v36 = vpop.f32.mrf.mxu1 }
 0x4bc   :  { %3387 = vmatprep.mubr.msk.f32.mxu0 %vm3710_vm3, %v3709_v50  ;;  %v1168_v30 = vadd.f32 %v3037_v35, %v1167_v36  ;;  %v1216_v36 = vld [vmem:[%s4393_s4 + $0x18] sm:$0xff] }
 0x4bd   :  { %v3375_v38 = vpop.f32.mrf.mxu1 }
 0x4be   :  { %v4082_v40 = vadd.f32 %v3375_v38, %v3037_v35 }
 0x4bf   :  { %3388 = vmatmul.mubr.f32.vlgmr.msra.gmra.mxu0 %v3709_v50  ;;  %v1177_v39 = vpop.f32.mrf.mxu1 }
 0x4c0   :  { %3391 = vmatpush3.msra.mxu0 %v3960_v5  ;;  %3398 = vmatprep.mubr.msk.f32.mxu0 %vm3710_vm3, %v3709_v50  ;;  %v4084_v41 = vadd.f32 %v3037_v35, %v1177_v39 }
 0x4c1   :  { %3392 = vmatprep.subr.mxu0 %v3709_v50  ;;  %v3378_v42 = vpop.f32.mrf.mxu1 }
 0x4c2   :  { %3393 = vmatpush3.msra.mxu0 %v3969_v6  ;;  %v4086_v43 = vadd.f32 %v3378_v42, %v3037_v35 }
 0x4c3   :  { %3394 = vmatprep.subr.mxu0 %v3709_v50  ;;  %v1187_v44 = vpop.f32.mrf.mxu1 }
 0x4c4   :  { %3395 = vmatpush3.msra.mxu0 %v3976_v7  ;;  %v4088_v45 = vadd.f32 %v3037_v35, %v1187_v44  ;;  %v1215_v35 = vld [vmem:[%s4393_s4 + $0x10] sm:$0xff] }
 0x4c5   :  { %3396 = vmatprep.subr.mxu0 %v3709_v50  ;;  %v1442_v46 = vpop.f32.mrf.mxu1  ;;  %1934 = vperm.xlu1 %3626, %v1215_v35  }
 0x4c6   :  { %3397 = vmatpush3.msra.mxu0 %v3983_v8  ;;  %v1443_v25 = vadd.f32 %v4108_v23, %v1442_v46  ;;  %v1218_v46 = vld [vmem:[%s4393_s4 + $0x28] sm:$0xff] }
 0x4c7   :  { %3399 = vmatmul.mubr.f32.vlgmr.msra.gmra.mxu0 %v3709_v50  ;;  %3412 = vmatprep.subr.mxu0 %v3709_v50  ;;  %v3411_v47 = vpop.f32.mrf.mxu1 }
 0x4c8   :  { %3413 = vmatpush3.msra.mxu0 %v4004_v18  ;;  %3420 = vmatprep.mubr.msk.f32.mxu0 %vm3710_vm3, %v3709_v50  ;;  %v1455_v47 = vpop.permute.xlu0 %1454 }
 0x4c9   :  { %3414 = vmatprep.subr.mxu0 %v3709_v50  ;;  %vm1457_vm4 = vcmp.gt.f32.partialorder %v1455_v47, 0.0  ;;  %2174 = vperm.xlu1 %3626, %v1216_v36  }
 0x4ca   :  { %3415 = vmatpush3.msra.mxu0 %v4012_v19 }
 0x4cb   :  { %3416 = vmatprep.subr.mxu0 %v3709_v50 }
 0x4cc   :  { %3417 = vmatpush3.msra.mxu0 %v4021_v20 }
 0x4cd   :  { %3418 = vmatprep.subr.mxu0 %v3709_v50  ;;  %2654 = vperm.xlu1 %3626, %v1218_v46  }
 0x4ce   :  { %3419 = vmatpush3.msra.mxu0 %v4030_v21 }
 0x4cf   :  { %3434 = vmatprep.subr.mxu0 %v3709_v50 }
 0x56f   :  { %v4090_v48 = vpop.f32.mrf.mxu0 }
 0x571   :  { %v3339_v49 = vpop.f32.mrf.mxu0 }
 0x573   :  { %v3359_v52 = vpop.f32.mrf.mxu0 }
 0x574   :  { %v4095_v53 = vadd.f32 %v3359_v52, %v3030_v51 }
 0x575   :  { %v1065_v54 = vpop.f32.mrf.mxu0 }
 0x576   :  { %v1066_v13 = vadd.f32 %v3030_v51, %v1065_v54 }
 0x577   :  { %v3362_v55 = vpop.f32.mrf.mxu0 }
 0x578   :  { %v4097_v56 = vadd.f32 %v3362_v55, %v3030_v51 }
 0x579   :  { %v1075_v57 = vpop.f32.mrf.mxu0 }
 0x57a   :  { %v4099_v58 = vadd.f32 %v3030_v51, %v1075_v57 }
 0x57b   :  { %v3365_v59 = vpop.f32.mrf.mxu0 }
 0x57c   :  { %v4101_v60 = vadd.f32 %v3365_v59, %v3030_v51 }
 0x57d   :  { %v1085_v61 = vpop.f32.mrf.mxu0 }
 0x57e   :  { %v4103_v0 = vadd.f32 %v3030_v51, %v1085_v61 }
 0x57f   :  { %v1288_v3 = vpop.f32.mrf.mxu0 }
 0x580   :  { %v1362_v9 = vadd.f32 %v1288_v3, %v964_v62 }
 0x581   :  { %v3389_v10 = vpop.f32.mrf.mxu0 }
 0x582   :  { %v3045_v11 = vmul.f32 -1.442695, %v1362_v9 }
 0x584   :  { %3627 = vpow2.f32 %v3045_v11 }
 0x587   :  { %v1358_v12 = vpop.f32.mrf.mxu0 }
 0x588   :  { %v1369_v15 = vadd.f32 %v1358_v12, %v1066_v13 }
 0x589   :  { %v3400_v14 = vpop.f32.mrf.mxu0 }
 0x58a   :  { %v3046_v16 = vmul.f32 -1.442695, %v1369_v15 }
 0x58c   :  { %3629 = vpow2.f32 %v3046_v16 }
 0x591   :  { %v3628_v17 = vpop.eup %3627 }
 0x592   :  { %v1366_v22 = vadd.f32 1.0, %v3628_v17 }
 0x594   :  { %3631 = vrcp.f32 %v1366_v22 }
 0x599   :  { %v3630_v26 = vpop.eup %3629 }
 0x59a   :  { %v1373_v34 = vadd.f32 1.0, %v3630_v26 }
 0x5a1   :  { %v3632_v27 = vpop.eup %3631 }
 0x5a2   :  { %v1446_v31 = vmul.f32 %v3632_v27, %v1443_v25 }
 0x5a4   :  { %v1447_v38 = vadd.f32 %v1446_v31, %v1168_v30  ;;  %v1695_v30 = vpop.permute.xlu0 %1694 }
 0x5a5   :  { %vm1697_vm5 = vcmp.gt.f32.partialorder %v1695_v30, 0.0 }
 0x5a6   :  { %3633 = vtanh.f32 %v1447_v38 }
 0x5a7   :  { %3635 = vrcp.f32 %v1373_v34 }
 0x5b3   :  { %v3634_v39 = vpop.eup %3633 }
 0x5b4   :  { %v1449_v42 = vsub.f32 0.0, %v3634_v39  ;;  %v3636_v44 = vpop.eup %3635 }
 0x5b6   :  { %v1450_v49 = vmul.f32 %v3636_v44, %v1449_v42 }
 0x5b8   :  { %v1451_v51 = vadd.f32 %v3634_v39, %v1450_v49 }
 0x5ba   :  { %v4111_v52 = vsel %vm1457_vm4, %v1451_v51, 0.0 }
 0x5bb   :  { %3421 = vmatmul.mubr.msk.f32.vlgmr.msra.gmra.mxu0 %vm370_vm2, %v4111_v52  ;;  %3432 = vmatmul.mubr.msk.f32.vlgmr.msra.gmra.mxu1 %vm370_vm2, %v4111_v52 }
 0x5bc   :  { %3435 = vmatpush3.msra.mxu0 %v3913_v63  ;;  %3442 = vmatprep.mubr.msk.f32.mxu0 %vm3710_vm3, %v3709_v50 }
 0x5bd   :  { %3436 = vmatprep.subr.mxu0 %v3709_v50  ;;  %3446 = vmatpush3.msra.mxu1 %v4004_v18 }
 0x5be   :  { %3437 = vmatpush3.msra.mxu0 %v3924_v1  ;;  %3447 = vmatprep.subr.mxu1 %v3709_v50 }
 0x5bf   :  { %3438 = vmatprep.subr.mxu0 %v3709_v50  ;;  %3448 = vmatpush3.msra.mxu1 %v4012_v19 }
 0x5c0   :  { %3439 = vmatpush3.msra.mxu0 %v3933_v2  ;;  %3449 = vmatprep.subr.mxu1 %v3709_v50 }
 0x5c1   :  { %3440 = vmatprep.subr.mxu0 %v3709_v50  ;;  %3450 = vmatpush3.msra.mxu1 %v4021_v20 }
 0x5c2   :  { %3441 = vmatpush3.msra.mxu0 %v3945_v4  ;;  %3451 = vmatprep.subr.mxu1 %v3709_v50 }
 0x5c3   :  { %3443 = vmatmul.mubr.msk.f32.vlgmr.msra.gmra.mxu0 %vm370_vm2, %v4111_v52  ;;  %3456 = vmatprep.subr.mxu0 %v3709_v50 }
 0x5c4   :  { %3457 = vmatpush3.msra.mxu0 %v3960_v5  ;;  %3452 = vmatpush3.msra.mxu1 %v4030_v21 }
 0x5c5   :  { %3458 = vmatprep.subr.mxu0 %v3709_v50  ;;  %3453 = vmatprep.mubr.msk.f32.mxu1 %vm3710_vm3, %v3709_v50 }
 0x5c6   :  { %3459 = vmatpush3.msra.mxu0 %v3969_v6  ;;  %3464 = vmatprep.mubr.msk.f32.mxu0 %vm3710_vm3, %v3709_v50 }
 0x5c7   :  { %3460 = vmatprep.subr.mxu0 %v3709_v50  ;;  %3467 = vmatprep.subr.mxu1 %v3709_v50 }
 0x5c8   :  { %3461 = vmatpush3.msra.mxu0 %v3976_v7 }
 0x5c9   :  { %3462 = vmatprep.subr.mxu0 %v3709_v50 }
 0x5ca   :  { %3463 = vmatpush3.msra.mxu0 %v3983_v8 }
 0x5cb   :  { %3478 = vmatprep.subr.mxu0 %v3709_v50 }
 0x67b   :  { %v1528_v54 = vpop.f32.mrf.mxu0  ;;  %v1598_v55 = vpop.f32.mrf.mxu1 }
 0x67c   :  { %v1602_v57 = vadd.f32 %v1528_v54, %v4067_v24  ;;  %v1609_v10 = vadd.f32 %v1598_v55, %v4095_v53 }
 0x67d   :  { %v3422_v59 = vpop.f32.mrf.mxu0  ;;  %v3433_v61 = vpop.f32.mrf.mxu1 }
 0x67e   :  { %v3049_v62 = vmul.f32 -1.442695, %v1602_v57  ;;  %v3050_v11 = vmul.f32 -1.442695, %v1609_v10  ;;  %v1935_v10 = vpop.permute.xlu1 %1934 }
 0x67f   :  { %vm1937_vm6 = vcmp.gt.f32.partialorder %v1935_v10, 0.0 }
 0x680   :  { %3637 = vpow2.f32 %v3049_v62 }
 0x681   :  { %3639 = vpow2.f32 %v3050_v11 }
 0x683   :  { %v1682_v3 = vpop.f32.mrf.mxu0 }
 0x684   :  { %v1683_v15 = vadd.f32 %v4108_v23, %v1682_v3 }
 0x685   :  { %v3444_v9 = vpop.f32.mrf.mxu0 }
 0x68d   :  { %v3638_v12 = vpop.eup %3637 }
 0x68e   :  { %v1606_v13 = vadd.f32 1.0, %v3638_v12  ;;  %v3640_v14 = vpop.eup %3639 }
 0x68f   :  { %v1613_v22 = vadd.f32 1.0, %v3640_v14 }
 0x690   :  { %3641 = vrcp.f32 %v1606_v13 }
 0x69d   :  { %v3642_v16 = vpop.eup %3641 }
 0x69e   :  { %v1686_v17 = vmul.f32 %v3642_v16, %v1683_v15 }
 0x6a0   :  { %v1687_v24 = vadd.f32 %v1686_v17, %v4080_v37 }
 0x6a2   :  { %3643 = vtanh.f32 %v1687_v24 }
 0x6a3   :  { %3645 = vrcp.f32 %v1613_v22 }
 0x6af   :  { %v3644_v25 = vpop.eup %3643 }
 0x6b0   :  { %v1689_v26 = vsub.f32 %v4111_v52, %v3644_v25  ;;  %v3646_v27 = vpop.eup %3645 }
 0x6b2   :  { %v1690_v53 = vmul.f32 %v3646_v27, %v1689_v26 }
 0x6b4   :  { %v1691_v31 = vadd.f32 %v3644_v25, %v1690_v53 }
 0x6b6   :  { %v1698_v34 = vsel %vm1697_vm5, %v1691_v31, %v4111_v52 }
 0x6b7   :  { %3454 = vmatmul.mubr.msk.f32.vlgmr.msra.gmra.mxu1 %vm370_vm2, %v1698_v34  ;;  %3465 = vmatmul.mubr.msk.f32.vlgmr.msra.gmra.mxu0 %vm370_vm2, %v1698_v34 }
 0x6b8   :  { %3468 = vmatpush3.msra.mxu1 %v3913_v63  ;;  %3475 = vmatprep.mubr.msk.f32.mxu1 %vm3710_vm3, %v3709_v50 }
 0x6b9   :  { %3469 = vmatprep.subr.mxu1 %v3709_v50  ;;  %3479 = vmatpush3.msra.mxu0 %v4004_v18 }
 0x6ba   :  { %3470 = vmatpush3.msra.mxu1 %v3924_v1  ;;  %3480 = vmatprep.subr.mxu0 %v3709_v50 }
 0x6bb   :  { %3471 = vmatprep.subr.mxu1 %v3709_v50  ;;  %3481 = vmatpush3.msra.mxu0 %v4012_v19 }
 0x6bc   :  { %3472 = vmatpush3.msra.mxu1 %v3933_v2  ;;  %3482 = vmatprep.subr.mxu0 %v3709_v50 }
 0x6bd   :  { %3473 = vmatprep.subr.mxu1 %v3709_v50  ;;  %3483 = vmatpush3.msra.mxu0 %v4021_v20 }
 0x6be   :  { %3474 = vmatpush3.msra.mxu1 %v3945_v4  ;;  %3484 = vmatprep.subr.mxu0 %v3709_v50 }
 0x6bf   :  { %3476 = vmatmul.mubr.msk.f32.vlgmr.msra.gmra.mxu1 %vm370_vm2, %v1698_v34  ;;  %3489 = vmatprep.subr.mxu1 %v3709_v50 }
 0x6c0   :  { %3490 = vmatpush3.msra.mxu1 %v3960_v5  ;;  %3485 = vmatpush3.msra.mxu0 %v4030_v21 }
 0x6c1   :  { %3491 = vmatprep.subr.mxu1 %v3709_v50  ;;  %3486 = vmatprep.mubr.msk.f32.mxu0 %vm3710_vm3, %v3709_v50 }
 0x6c2   :  { %3492 = vmatpush3.msra.mxu1 %v3969_v6  ;;  %3497 = vmatprep.mubr.msk.f32.mxu1 %vm3710_vm3, %v3709_v50 }
 0x6c3   :  { %3493 = vmatprep.subr.mxu1 %v3709_v50  ;;  %3500 = vmatprep.subr.mxu0 %v3709_v50 }
 0x6c4   :  { %3494 = vmatpush3.msra.mxu1 %v3976_v7 }
 0x6c5   :  { %3495 = vmatprep.subr.mxu1 %v3709_v50 }
 0x6c6   :  { %3496 = vmatpush3.msra.mxu1 %v3983_v8 }
 0x6c7   :  { %3511 = vmatprep.subr.mxu1 %v3709_v50 }
 0x777   :  { %v1768_v37 = vpop.f32.mrf.mxu1  ;;  %v1838_v38 = vpop.f32.mrf.mxu0 }
 0x778   :  { %v1842_v39 = vadd.f32 %v1768_v37, %v4071_v29  ;;  %v1849_v52 = vadd.f32 %v1838_v38, %v4099_v58 }
 0x779   :  { %v3455_v42 = vpop.f32.mrf.mxu1  ;;  %v3466_v44 = vpop.f32.mrf.mxu0 }
 0x77a   :  { %v3054_v47 = vmul.f32 -1.442695, %v1842_v39  ;;  %v3055_v35 = vmul.f32 -1.442695, %v1849_v52 }
 0x77c   :  { %3647 = vpow2.f32 %v3054_v47 }
 0x77d   :  { %3649 = vpow2.f32 %v3055_v35 }
 0x77f   :  { %v1922_v49 = vpop.f32.mrf.mxu1 }
 0x780   :  { %v1923_v55 = vadd.f32 %v4108_v23, %v1922_v49 }
 0x781   :  { %v3477_v51 = vpop.f32.mrf.mxu1 }
 0x789   :  { %v3648_v36 = vpop.eup %3647 }
 0x78a   :  { %v1846_v46 = vadd.f32 1.0, %v3648_v36  ;;  %v3650_v54 = vpop.eup %3649 }
 0x78b   :  { %v1853_v61 = vadd.f32 1.0, %v3650_v54 }
 0x78c   :  { %3651 = vrcp.f32 %v1846_v46 }
 0x799   :  { %v3652_v57 = vpop.eup %3651 }
 0x79a   :  { %v1926_v59 = vmul.f32 %v3652_v57, %v1923_v55 }
 0x79c   :  { %v1927_v29 = vadd.f32 %v1926_v59, %v4084_v41 }
 0x79e   :  { %3653 = vtanh.f32 %v1927_v29 }
 0x79f   :  { %3655 = vrcp.f32 %v1853_v61 }
 0x7ab   :  { %v3654_v62 = vpop.eup %3653 }
 0x7ac   :  { %v1929_v3 = vsub.f32 %v1698_v34, %v3654_v62  ;;  %v3656_v9 = vpop.eup %3655 }
 0x7ae   :  { %v1930_v58 = vmul.f32 %v3656_v9, %v1929_v3  ;;  %v2415_v3 = vpop.permute.xlu0 %2414 }
 0x7af   :  { %vm2417_vm8 = vcmp.gt.f32.partialorder %v2415_v3, 0.0 }
 0x7b0   :  { %v1931_v11 = vadd.f32 %v3654_v62, %v1930_v58 }
 0x7b2   :  { %v1938_v12 = vsel %vm1937_vm6, %v1931_v11, %v1698_v34  ;;  %v2666_v11 = vld [vmem:[%s4394_s5 + $0x158] sm:$0xff] }
 0x7b3   :  { %3487 = vmatmul.mubr.msk.f32.vlgmr.msra.gmra.mxu0 %vm370_vm2, %v1938_v12  ;;  %3498 = vmatmul.mubr.msk.f32.vlgmr.msra.gmra.mxu1 %vm370_vm2, %v1938_v12 }
 0x7b4   :  { %3501 = vmatpush3.msra.mxu0 %v3913_v63  ;;  %3508 = vmatprep.mubr.msk.f32.mxu0 %vm3710_vm3, %v3709_v50 }
 0x7b5   :  { %3502 = vmatprep.subr.mxu0 %v3709_v50  ;;  %3512 = vmatpush3.msra.mxu1 %v4004_v18 }
 0x7b6   :  { %3503 = vmatpush3.msra.mxu0 %v3924_v1  ;;  %3513 = vmatprep.subr.mxu1 %v3709_v50 }
 0x7b7   :  { %3504 = vmatprep.subr.mxu0 %v3709_v50  ;;  %3514 = vmatpush3.msra.mxu1 %v4012_v19 }
 0x7b8   :  { %3505 = vmatpush3.msra.mxu0 %v3933_v2  ;;  %3515 = vmatprep.subr.mxu1 %v3709_v50 }
 0x7b9   :  { %3506 = vmatprep.subr.mxu0 %v3709_v50  ;;  %3516 = vmatpush3.msra.mxu1 %v4021_v20 }
 0x7ba   :  { %3507 = vmatpush3.msra.mxu0 %v3945_v4  ;;  %3517 = vmatprep.subr.mxu1 %v3709_v50 }
 0x7bb   :  { %3509 = vmatmul.mubr.msk.f32.vlgmr.msra.gmra.mxu0 %vm370_vm2, %v1938_v12  ;;  %3522 = vmatprep.subr.mxu0 %v3709_v50 }
 0x7bc   :  { %3523 = vmatpush3.msra.mxu0 %v3960_v5  ;;  %3518 = vmatpush3.msra.mxu1 %v4030_v21 }
 0x7bd   :  { %3524 = vmatprep.subr.mxu0 %v3709_v50  ;;  %3519 = vmatprep.mubr.msk.f32.mxu1 %vm3710_vm3, %v3709_v50 }
 0x7be   :  { %3525 = vmatpush3.msra.mxu0 %v3969_v6  ;;  %3530 = vmatprep.mubr.msk.f32.mxu0 %vm3710_vm3, %v3709_v50 }
 0x7bf   :  { %3526 = vmatprep.subr.mxu0 %v3709_v50  ;;  %3533 = vmatprep.subr.mxu1 %v3709_v50 }
 0x7c0   :  { %3527 = vmatpush3.msra.mxu0 %v3976_v7 }
 0x7c1   :  { %3528 = vmatprep.subr.mxu0 %v3709_v50 }
 0x7c2   :  { %3529 = vmatpush3.msra.mxu0 %v3983_v8 }
 0x7c3   :  { %3544 = vmatprep.subr.mxu0 %v3709_v50 }
 0x873   :  { %v2008_v41 = vpop.f32.mrf.mxu0  ;;  %v2078_v13 = vpop.f32.mrf.mxu1 }
 0x874   :  { %v2082_v14 = vadd.f32 %v2008_v41, %v4069_v28  ;;  %v2089_v25 = vadd.f32 %v2078_v13, %v4097_v56  ;;  %v2175_v56 = vpop.permute.xlu1 %2174  ;;  %v2663_v41 = vld [vmem:[%s4394_s5 + $0x140] sm:$0xff] }
 0x875   :  { %v3488_v15 = vpop.f32.mrf.mxu0  ;;  %v3499_v16 = vpop.f32.mrf.mxu1  ;;  %vm2177_vm7 = vcmp.gt.f32.partialorder %v2175_v56, 0.0 }
 0x876   :  { %v3059_v17 = vmul.f32 -1.442695, %v2082_v14  ;;  %v3060_v26 = vmul.f32 -1.442695, %v2089_v25 }
 0x878   :  { %3657 = vpow2.f32 %v3059_v17  ;;  %v2655_v56 = vpop.permute.xlu1 %2654 }
 0x879   :  { %3659 = vpow2.f32 %v3060_v26  ;;  %vm2657_vm9 = vcmp.gt.f32.partialorder %v2655_v56, 0.0 }
 0x87b   :  { %v2162_v22 = vpop.f32.mrf.mxu0 }
 0x87c   :  { %v2163_v31 = vadd.f32 %v4108_v23, %v2162_v22 }
 0x87d   :  { %v3510_v24 = vpop.f32.mrf.mxu0 }
 0x885   :  { %v3658_v27 = vpop.eup %3657 }
 0x886   :  { %v2086_v53 = vadd.f32 1.0, %v3658_v27  ;;  %v3660_v30 = vpop.eup %3659 }
 0x887   :  { %v2093_v38 = vadd.f32 1.0, %v3660_v30 }
 0x888   :  { %3661 = vrcp.f32 %v2086_v53 }
 0x895   :  { %v3662_v34 = vpop.eup %3661 }
 0x896   :  { %v2166_v37 = vmul.f32 %v3662_v34, %v2163_v31 }
 0x898   :  { %v2167_v28 = vadd.f32 %v2166_v37, %v4082_v40 }
 0x89a   :  { %3663 = vtanh.f32 %v2167_v28 }
 0x89b   :  { %3665 = vrcp.f32 %v2093_v38 }
 0x8a7   :  { %v3664_v39 = vpop.eup %3663 }
 0x8a8   :  { %v2169_v42 = vsub.f32 %v1938_v12, %v3664_v39  ;;  %v3666_v44 = vpop.eup %3665 }
 0x8aa   :  { %v2170_v47 = vmul.f32 %v3666_v44, %v2169_v42 }
 0x8ac   :  { %v2171_v49 = vadd.f32 %v3664_v39, %v2170_v47 }
 0x8ae   :  { %v2178_v51 = vsel %vm2177_vm7, %v2171_v49, %v1938_v12  ;;  %v2665_v12 = vld [vmem:[%s4394_s5 + $0x150] sm:$0xff] }
 0x8af   :  { %3520 = vmatmul.mubr.msk.f32.vlgmr.msra.gmra.mxu1 %vm370_vm2, %v2178_v51  ;;  %3531 = vmatmul.mubr.msk.f32.vlgmr.msra.gmra.mxu0 %vm370_vm2, %v2178_v51 }
 0x8b0   :  { %3534 = vmatpush3.msra.mxu1 %v3913_v63  ;;  %3541 = vmatprep.mubr.msk.f32.mxu1 %vm3710_vm3, %v3709_v50 }
 0x8b1   :  { %3535 = vmatprep.subr.mxu1 %v3709_v50  ;;  %3545 = vmatpush3.msra.mxu0 %v4004_v18 }
 0x8b2   :  { %3536 = vmatpush3.msra.mxu1 %v3924_v1  ;;  %3546 = vmatprep.subr.mxu0 %v3709_v50 }
 0x8b3   :  { %3537 = vmatprep.subr.mxu1 %v3709_v50  ;;  %3547 = vmatpush3.msra.mxu0 %v4012_v19 }
 0x8b4   :  { %3538 = vmatpush3.msra.mxu1 %v3933_v2  ;;  %3548 = vmatprep.subr.mxu0 %v3709_v50 }
 0x8b5   :  { %3539 = vmatprep.subr.mxu1 %v3709_v50  ;;  %3549 = vmatpush3.msra.mxu0 %v4021_v20 }
 0x8b6   :  { %3540 = vmatpush3.msra.mxu1 %v3945_v4  ;;  %3550 = vmatprep.subr.mxu0 %v3709_v50 }
 0x8b7   :  { %3542 = vmatmul.mubr.msk.f32.vlgmr.msra.gmra.mxu1 %vm370_vm2, %v2178_v51  ;;  %3555 = vmatprep.subr.mxu1 %v3709_v50 }
 0x8b8   :  { %3556 = vmatpush3.msra.mxu1 %v3960_v5  ;;  %3551 = vmatpush3.msra.mxu0 %v4030_v21 }
 0x8b9   :  { %3557 = vmatprep.subr.mxu1 %v3709_v50  ;;  %3552 = vmatprep.mubr.msk.f32.mxu0 %vm3710_vm3, %v3709_v50 }
 0x8ba   :  { %3558 = vmatpush3.msra.mxu1 %v3969_v6  ;;  %3563 = vmatprep.mubr.msk.f32.mxu1 %vm3710_vm3, %v3709_v50 }
 0x8bb   :  { %3559 = vmatprep.subr.mxu1 %v3709_v50  ;;  %3566 = vmatprep.subr.mxu0 %v3709_v50 }
 0x8bc   :  { %3560 = vmatpush3.msra.mxu1 %v3976_v7 }
 0x8bd   :  { %3561 = vmatprep.subr.mxu1 %v3709_v50 }
 0x8be   :  { %3562 = vmatpush3.msra.mxu1 %v3983_v8 }
 0x8bf   :  { %3577 = vmatprep.subr.mxu1 %v3709_v50 }
 0x96f   :  { %v2248_v5 = vpop.f32.mrf.mxu1  ;;  %v2318_v18 = vpop.f32.mrf.mxu0 }
 0x970   :  { %v2322_v19 = vadd.f32 %v2248_v5, %v4075_v33  ;;  %v2329_v35 = vadd.f32 %v2318_v18, %v4103_v0  ;;  %v2821_v18 = vld [vmem:[%s4394_s5 + $0x168] sm:$0xff] }
 0x971   :  { %v3521_v6 = vpop.f32.mrf.mxu1  ;;  %v3532_v20 = vpop.f32.mrf.mxu0 }
 0x972   :  { %v3064_v21 = vmul.f32 -1.442695, %v2322_v19  ;;  %v3065_v36 = vmul.f32 -1.442695, %v2329_v35  ;;  %v2820_v19 = vld [vmem:[%s4394_s5 + $0x160] sm:$0xff]  ;;  %v2906_v6 = vld [vmem:[%s4394_s5 + $0x198] sm:$0xff] }
 0x974   :  { %3667 = vpow2.f32 %v3064_v21  ;;  %v3074_v21 = vld [vmem:[%s4395_s6 + $0x7] ss:$0 sm:$0xff] }
 0x975   :  { %3669 = vpow2.f32 %v3065_v36 }
 0x977   :  { %v2402_v40 = vpop.f32.mrf.mxu1 }
 0x978   :  { %v2403_v54 = vadd.f32 %v4108_v23, %v2402_v40 }
 0x979   :  { %v3543_v52 = vpop.f32.mrf.mxu1 }
 0x981   :  { %v3668_v7 = vpop.eup %3667 }
 0x982   :  { %v2326_v46 = vadd.f32 1.0, %v3668_v7  ;;  %v3670_v8 = vpop.eup %3669  ;;  %v2905_v7 = vld [vmem:[%s4394_s5 + $0x190] sm:$0xff] }
 0x983   :  { %v2333_v59 = vadd.f32 1.0, %v3670_v8  ;;  %v2903_v8 = vld [vmem:[%s4394_s5 + $0x180] sm:$0xff] }
 0x984   :  { %3671 = vrcp.f32 %v2326_v46  ;;  %v2904_v46 = vld [vmem:[%s4394_s5 + $0x188] sm:$0xff] }
 0x991   :  { %v3672_v55 = vpop.eup %3671 }
 0x992   :  { %v2406_v57 = vmul.f32 %v3672_v55, %v2403_v54  ;;  %v3075_v54 = vld [vmem:[%s4395_s6 + $0x8] ss:$0 sm:$0xff] }
 0x994   :  { %v2407_v33 = vadd.f32 %v2406_v57, %v4088_v45  ;;  %v2659_v45 = vld [vmem:[%s4394_s5 + $0x120] sm:$0xff] }
 0x996   :  { %3673 = vtanh.f32 %v2407_v33 }
 0x997   :  { %3675 = vrcp.f32 %v2333_v59 }
 0x9a3   :  { %v3674_v61 = vpop.eup %3673 }
 0x9a4   :  { %v2409_v29 = vsub.f32 %v2178_v51, %v3674_v61  ;;  %v3676_v62 = vpop.eup %3675 }
 0x9a6   :  { %v2410_v0 = vmul.f32 %v3676_v62, %v2409_v29 }
 0x9a8   :  { %v2411_v9 = vadd.f32 %v3674_v61, %v2410_v0  ;;  %v3077_v61 = vld [vmem:[%s4395_s6 + $0x9] ss:$0 sm:$0xff] }
 0x9aa   :  { %v4275_v10 = vsel %vm2417_vm8, %v2411_v9, %v2178_v51 }
 0x9ab   :  { %3553 = vmatmul.mubr.msk.f32.vlgmr.msra.gmra.mxu0 %vm370_vm2, %v4275_v10  ;;  %3564 = vmatmul.mubr.msk.f32.vlgmr.msra.gmra.mxu1 %vm370_vm2, %v4275_v10 }
 0x9ac   :  { %3567 = vmatpush3.msra.mxu0 %v3913_v63  ;;  %3574 = vmatprep.mubr.msk.f32.mxu0 %vm3710_vm3, %v3709_v50  ;;  %v2662_v63 = vld [vmem:[%s4394_s5 + $0x138] sm:$0xff] }
 0x9ad   :  { %3568 = vmatprep.subr.mxu0 %v3709_v50  ;;  %3585 = vmatprep.mubr.msk.f32.mxu1 %vm3710_vm3, %v3709_v50 }
 0x9ae   :  { %3569 = vmatpush3.msra.mxu0 %v3924_v1  ;;  %v2661_v1 = vld [vmem:[%s4394_s5 + $0x130] sm:$0xff]  ;;  %3578 = vmatpush3.msra.mxu1 %v2666_v11 }
 0x9af   :  { %3570 = vmatprep.subr.mxu0 %v3709_v50  ;;  %3579 = vmatprep.subr.mxu1 %v3709_v50 }
 0x9b0   :  { %3571 = vmatpush3.msra.mxu0 %v3933_v2  ;;  %v2660_v2 = vld [vmem:[%s4394_s5 + $0x128] sm:$0xff]  ;;  %3580 = vmatpush3.msra.mxu1 %v2665_v12 }
 0x9b1   :  { %3572 = vmatprep.subr.mxu0 %v3709_v50  ;;  %3581 = vmatprep.subr.mxu1 %v3709_v50 }
 0x9b2   :  { %3573 = vmatpush3.msra.mxu0 %v3945_v4  ;;  %v3021_v4 = vld [vmem:[%s4395_s6 + $0x2] ss:$0 sm:$0xff] }
 0x9b3   :  { %3575 = vmatmul.mubr.msk.f32.vlgmr.msra.gmra.mxu0 %vm370_vm2, %v4275_v10  ;;  %3588 = vmatprep.subr.mxu0 %v3709_v50  ;;  %v863_v58 = vadd.f32 %v3021_v4, %v4090_v48  ;;  %v2664_v48 = vld [vmem:[%s4394_s5 + $0x148] sm:$0xff] }
 0x9b4   :  { %3589 = vmatpush3.msra.mxu0 %v2662_v63  ;;  %3596 = vmatprep.mubr.msk.f32.mxu0 %vm3710_vm3, %v3709_v50 }
 0x9b5   :  { %3590 = vmatprep.subr.mxu0 %v3709_v50  ;;  %3582 = vmatpush3.msra.mxu1 %v2664_v48 }
 0x9b6   :  { %3591 = vmatpush3.msra.mxu0 %v2661_v1  ;;  %3583 = vmatprep.subr.mxu1 %v3709_v50 }
 0x9b7   :  { %3592 = vmatprep.subr.mxu0 %v3709_v50  ;;  %3584 = vmatpush3.msra.mxu1 %v2663_v41 }
 0x9b8   :  { %3593 = vmatpush3.msra.mxu0 %v2660_v2  ;;  %3599 = vmatprep.subr.mxu1 %v3709_v50 }
 0x9b9   :  { %3594 = vmatprep.subr.mxu0 %v3709_v50 }
 0x9ba   :  { %3595 = vmatpush3.msra.mxu0 %v2659_v45 }
 0x9bb   :  { %3597 = vmatmul.mubr.msk.f32.vlgmr.msra.gmra.mxu0 %vm370_vm2, %v863_v58  ;;  %3610 = vmatprep.subr.mxu0 %v3709_v50 }
 0x9bc   :  { %3618 = vmatprep.mubr.msk.f32.mxu0 %vm3710_vm3, %v3709_v50  ;;  %3611 = vmatpush3.msra.mxu0 %v2906_v6 }
 0x9bd   :  { %3612 = vmatprep.subr.mxu0 %v3709_v50 }
 0x9be   :  { %3613 = vmatpush3.msra.mxu0 %v2905_v7 }
 0x9bf   :  { %3614 = vmatprep.subr.mxu0 %v3709_v50 }
 0x9c0   :  { %3615 = vmatpush3.msra.mxu0 %v2904_v46 }
 0x9c1   :  { %3616 = vmatprep.subr.mxu0 %v3709_v50 }
 0x9c2   :  { %3617 = vmatpush3.msra.mxu0 %v2903_v8 }
 0xa6b   :  { %v2488_v13 = vpop.f32.mrf.mxu0  ;;  %v2558_v14 = vpop.f32.mrf.mxu1 }
 0xa6c   :  { %v2562_v15 = vadd.f32 %v2488_v13, %v4073_v32  ;;  %v2569_v26 = vadd.f32 %v2558_v14, %v4101_v60 }
 0xa6d   :  { %v3554_v16 = vpop.f32.mrf.mxu0  ;;  %v3565_v17 = vpop.f32.mrf.mxu1 }
 0xa6e   :  { %v3069_v22 = vmul.f32 -1.442695, %v2562_v15  ;;  %v3070_v27 = vmul.f32 -1.442695, %v2569_v26 }
 0xa70   :  { %3677 = vpow2.f32 %v3069_v22 }
 0xa71   :  { %3679 = vpow2.f32 %v3070_v27 }
 0xa73   :  { %v2642_v24 = vpop.f32.mrf.mxu0 }
 0xa74   :  { %v2643_v38 = vadd.f32 %v4108_v23, %v2642_v24  ;;  %v2822_v23 = vld [vmem:[%s4394_s5 + $0x170] sm:$0xff] }
 0xa75   :  { %v3576_v25 = vpop.f32.mrf.mxu0 }
 0xa7b   :  { %v2809_v53 = vpop.f32.mrf.mxu0 }
 0xa7d   :  { %v3678_v30 = vpop.eup %3677  ;;  %v3598_v31 = vpop.f32.mrf.mxu0 }
 0xa7e   :  { %v2566_v34 = vadd.f32 1.0, %v3678_v30  ;;  %v3680_v37 = vpop.eup %3679 }
 0xa7f   :  { %v2573_v39 = vadd.f32 1.0, %v3680_v37 }
 0xa80   :  { %3681 = vrcp.f32 %v2566_v34 }
 0xa8d   :  { %v3682_v28 = vpop.eup %3681 }
 0xa8e   :  { %v2646_v32 = vmul.f32 %v3682_v28, %v2643_v38 }
 0xa90   :  { %v2647_v42 = vadd.f32 %v2646_v32, %v4086_v43  ;;  %v2823_v43 = vld [vmem:[%s4394_s5 + $0x178] sm:$0xff]  ;;  %s3687_s5 = scalar_lea.vmem %s2994_s24, 32 }
 0xa91   :  { %p3688_p0 = scmp.ne.s32.totalorder %s2994_s24, %s3687_s5  ;;  %p3693_p2 = scmp.lt.s32.totalorder %s3687_s5, %s3687_s5 }
 0xa92   :  { %3683 = vtanh.f32 %v2647_v42 }
 0xa93   :  { %3685 = vrcp.f32 %v2573_v39  ;;  %p3694_p3 = por %p3693_p2, %p3692_p1 }
 0xa95   :  { %p3695_p4 = pnand %p3694_p3, %p3688_p0 }
 0xa9f   :  { %v3684_v44 = vpop.eup %3683 }
 0xaa0   :  { %v2649_v60 = vsub.f32 %v4275_v10, %v3684_v44  ;;  %v3686_v47 = vpop.eup %3685 }
 0xaa2   :  { %v2650_v49 = vmul.f32 %v3686_v47, %v2649_v60 }
 0xaa4   :  { %v2651_v51 = vadd.f32 %v3684_v44, %v2650_v49 }
 0xaa6   :  { %v2658_v5 = vsel %vm2657_vm9, %v2651_v51, %v4275_v10 }
 0xaa7   :  { %3586 = vmatmul.mubr.msk.f32.vlgmr.msra.gmra.mxu1 %vm370_vm2, %v2658_v5 }
 0xaa8   :  { %3607 = vmatprep.mubr.msk.f32.mxu1 %vm3710_vm3, %v3709_v50  ;;  %3600 = vmatpush3.msra.mxu1 %v2823_v43 }
 0xaa9   :  { %3601 = vmatprep.subr.mxu1 %v3709_v50 }
 0xaaa   :  { %3602 = vmatpush3.msra.mxu1 %v2822_v23 }
 0xaab   :  { %3603 = vmatprep.subr.mxu1 %v3709_v50 }
 0xaac   :  { %3604 = vmatpush3.msra.mxu1 %v2821_v18 }
 0xaad   :  { %3605 = vmatprep.subr.mxu1 %v3709_v50 }
 0xaae   :  { %3606 = vmatpush3.msra.mxu1 %v2820_v19 }
 0xb67   :  { %v2736_v20 = vpop.f32.mrf.mxu1 }
 0xb68   :  { %v2810_v40 = vadd.f32 %v2809_v53, %v2736_v20 }
 0xb69   :  { %v3587_v52 = vpop.f32.mrf.mxu1 }
 0xb6a   :  { %v2818_v35 = vadd.f32 %v3074_v21, %v2810_v40 }
 0xb6c   :  { %v2819_v36 = vmax.f32 %v2818_v35, 0.0 }
 0xb6e   :  { %3608 = vmatmul.mubr.msk.f32.vlgmr.msra.gmra.mxu1 %vm370_vm2, %v2819_v36 }
 0xc2e   :  { %v2898_v55 = vpop.f32.mrf.mxu1 }
 0xc2f   :  { %v2899_v57 = vadd.f32 %v3075_v54, %v2898_v55 }
 0xc30   :  { %v3609_v59 = vpop.f32.mrf.mxu1 }
 0xc31   :  { %v2902_v33 = vmax.f32 %v2899_v57, 0.0 }
 0xc33   :  { %3619 = vmatmul.mubr.msk.f32.vlgmr.msra.gmra.mxu0 %vm370_vm2, %v2902_v33 }
 0xcf3   :  { %v2981_v29 = vpop.f32.mrf.mxu0 }
 0xcf4   :  { %v2982_v50 = vadd.f32 %v3077_v61, %v2981_v29 }
 0xcf5   :  { %v3620_v62 = vpop.f32.mrf.mxu0 }
 0xcf6   :  { %2986 = vst.msk [vmem:[#allocation2] sm:$0x3] %vm2985_vm10, %v2982_v50 }
 0xcf7   :  { %3698 = shalt.err (!%p3695_p4)
}
 0xcf8   :  { %2996 = dma.vmem_to_hbm [thread:$0]  %s2994_s24, 32, %s4396_s7, [#allocation3]  }
 0xcf9   :  { %3707 = dma.done.wait [#allocation3], 32  }
 0xcfa   :  { %3708 = vsyncadd [#allocation3], 4294967264 }
 0xcfb   :  { %3000 = vsyncpa [#allocation3], 1 }

</bundles_post_ra>
